<compile_context>
chip_gen: v7x
topology: tpu7x:2x2x1
jax: 0.10.0
libtpu: 0.0.40
codegen_flags: <defaults>
</compile_context>

<pallas_src>
import functools

import jax
import jax.numpy as jnp
from jax.experimental import pallas as pl
from jax.experimental.pallas import tpu as pltpu

LN_EPS = 1e-5  # torch.nn.LayerNorm default


def _round_up(x, m):
    return ((x + m - 1) // m) * m


def _layernorm(x, w, b):
    mean = jnp.mean(x, axis=-1, keepdims=True)
    xc = x - mean
    var = jnp.mean(xc * xc, axis=-1, keepdims=True)
    return xc * jax.lax.rsqrt(var + LN_EPS) * w + b


# ----------------------------------------------------------------------------
# Kernel
# ----------------------------------------------------------------------------
def bond_ffn_kernel(x_ref, w_in_ref, w_mid_ref, w_out_ref, aux_ref, out_ref,
                    *, inter_dim, gate_hidden, out_dim):
    f32 = jnp.float32
    mm_dtype = w_in_ref.dtype            # bf16 (default) or f32
    W = inter_dim + gate_hidden

    # Packed per-edge activations [bond | node | t | 0] — one lane-dense stream.
    x = x_ref[...].astype(mm_dtype)      # (TE, K_pad)

    # Two fused projections over the same input:
    #   pb = [bond@wb | bond@wgb],  pn = [node@wn | node@wgn + t*wgt]
    pb = jnp.dot(x, w_in_ref[0], preferred_element_type=f32)   # (TE, W)
    pn = jnp.dot(x, w_in_ref[1], preferred_element_type=f32)   # (TE, W)

    lane = jax.lax.broadcasted_iota(jnp.int32, pb.shape, dimension=1)
    is_h = lane < inter_dim              # lower lanes = inter path, upper = gate

    # inter = bond_feat*node_feat lives in the lower lanes; the garbage upper-
    # lane products are killed by the zero rows of the padded w_mid.
    prod = pb * pn
    gate_pre = jnp.where(is_h, 0.0, pb + pn)

    aux = aux_ref[...]                   # (4, AW) f32
    b_mid = aux[0:1, :W]                 # [b1 | bg1]
    ln_w = aux[1:2, :W]                  # [ln1w | lngw]
    ln_b = aux[2:3, :W]                  # [ln1b | lngb]
    b_out = aux[3:4, :2 * out_dim]       # [b2 | bg2]

    # Lane-dense packed pre-activation [h_pre | g_pre]  (TE, W)
    hg = (jnp.dot(prod.astype(mm_dtype), w_mid_ref[...],
                  preferred_element_type=f32)
          + gate_pre + b_mid)

    # Segmented LayerNorm over the two lane groups; sum_g/var_g obtained by
    # subtraction from the full-lane reduction (fewer masked selects).
    inv_h = 1.0 / inter_dim
    inv_g = 1.0 / gate_hidden
    s_all = jnp.sum(hg, axis=-1, keepdims=True)
    s_h = jnp.sum(jnp.where(is_h, hg, 0.0), axis=-1, keepdims=True)
    mean = jnp.where(is_h, s_h * inv_h, (s_all - s_h) * inv_g)
    xc = hg - mean
    xc2 = xc * xc
    v_all = jnp.sum(xc2, axis=-1, keepdims=True)
    v_h = jnp.sum(jnp.where(is_h, xc2, 0.0), axis=-1, keepdims=True)
    rstd = jnp.where(is_h,
                     jax.lax.rsqrt(v_h * inv_h + LN_EPS),
                     jax.lax.rsqrt((v_all - v_h) * inv_g + LN_EPS))
    hg = jnp.maximum(xc * rstd * ln_w + ln_b, 0.0)

    # Fused second Linears: [h|g] @ blockdiag(w2, wg2) -> [inter_out | gate],
    # a lane-dense (TE, 2*out_dim) slab from one MXU dot.
    og = (jnp.dot(hg.astype(mm_dtype), w_out_ref[...],
                  preferred_element_type=f32)
          + b_out)

    if (2 * out_dim) % 128 == 0:
        # Align gate under the inter lanes via the XLU (free slot) instead of
        # two mid-tile lane slices; single masked store of the lower lanes.
        gate_aligned = pltpu.roll(og, shift=out_dim, axis=1)
        full = og * jax.nn.sigmoid(gate_aligned)
        out_ref[...] = full[:, :out_dim].astype(out_ref.dtype)
    else:
        inter_out = og[:, :out_dim]
        gate = og[:, out_dim:]
        out_ref[...] = (inter_out * jax.nn.sigmoid(gate)).astype(out_ref.dtype)


# ----------------------------------------------------------------------------
# Parameter / input packing (do once, offline)
# ----------------------------------------------------------------------------
def pack_params(p, matmul_dtype=jnp.bfloat16):
    """Pack the 16 module tensors into 4 kernel constants."""
    bond_dim, inter_dim = p["wb"].shape
    node_dim = p["wn"].shape[0]
    gh = p["wgb"].shape[1]
    out_dim = p["w2"].shape[1]
    W = inter_dim + gh
    K = bond_dim + node_dim + 1
    k_pad = _round_up(K, 128)

    def z(*s):
        return jnp.zeros(s, jnp.float32)

    # Input projections, zero-row padded to the packed-activation depth k_pad:
    #   x = [bond | node | t | 0]  ->  pb = x @ w_in[0],  pn = x @ w_in[1]
    w_b = jnp.concatenate(
        [jnp.concatenate([p["wb"], p["wgb"]], axis=1),
         z(k_pad - bond_dim, W)], axis=0)                         # (k_pad, W)
    w_n = jnp.concatenate(
        [z(bond_dim, W),
         jnp.concatenate([p["wn"], p["wgn"]], axis=1),
         jnp.concatenate([z(1, inter_dim), p["wgt"]], axis=1),    # time row
         z(k_pad - K, W)], axis=0)                                # (k_pad, W)
    w_in = jnp.stack([w_b, w_n], axis=0)                          # (2, k_pad, W)

    w_mid = jnp.concatenate(
        [jnp.concatenate([p["w1"], z(inter_dim, gh)], axis=1),
         z(gh, W)], axis=0)                                       # (W, W)
    w_out = jnp.concatenate(
        [jnp.concatenate([p["w2"], z(inter_dim, out_dim)], axis=1),
         jnp.concatenate([z(gh, out_dim), p["wg2"]], axis=1)],
        axis=0)                                                   # (W, 2*out)

    aw = max(W, 2 * out_dim)

    def row(v):
        return jnp.pad(v, ((0, 0), (0, aw - v.shape[1])))

    aux = jnp.concatenate(
        [row(jnp.concatenate([p["b1"], p["bg1"]], axis=1)),
         row(jnp.concatenate([p["ln1w"], p["lngw"]], axis=1)),
         row(jnp.concatenate([p["ln1b"], p["lngb"]], axis=1)),
         row(jnp.concatenate([p["b2"], p["bg2"]], axis=1))], axis=0)  # (4, aw) f32

    return {
        "w_in": w_in.astype(matmul_dtype),
        "w_mid": w_mid.astype(matmul_dtype),
        "w_out": w_out.astype(matmul_dtype),
        "aux": aux.astype(jnp.float32),
        "bond_dim": bond_dim, "node_dim": node_dim,
        "inter_dim": inter_dim, "gate_hidden": gh, "out_dim": out_dim,
        "k_pad": k_pad,
    }


def pack_edge_inputs(bond_x, node_x, time, k_pad):
    """Lane-dense per-edge slab [bond | node | t | 0-pad] of width k_pad.

    In a real model this slab should be emitted directly by the upstream op
    (avoiding a separate HBM concat pass); here it is built once for the demo.
    """
    K = bond_x.shape[1] + node_x.shape[1] + 1
    x = jnp.concatenate(
        [bond_x, node_x.astype(bond_x.dtype), time.astype(bond_x.dtype)],
        axis=-1)
    if k_pad > K:
        x = jnp.pad(x, ((0, 0), (0, k_pad - K)))
    return x


# ----------------------------------------------------------------------------
# Wrappers
# ----------------------------------------------------------------------------
def _choose_tile(E, tile_e):
    """Row tile: multiple of 8, <= E, and >= 2 grid steps when work allows
    (so the 'parallel' edge axis can shard across v7x's two TensorCores)."""
    tile_e = max(8, min(int(tile_e), E))
    if tile_e >= E:
        return E                       # single full block (== array dim is legal)
    half = _round_up((E + 1) // 2, 8)
    if tile_e > half:
        tile_e = half
    else:
        tile_e = max(8, (tile_e // 8) * 8)
    return min(tile_e, E)


def bond_ffn_packed(x, packed, *, tile_e=2048, out_dtype=jnp.float32,
                    vmem_limit_bytes=48 * 1024 * 1024):
    """x: (E, k_pad) lane-dense packed activations (see pack_edge_inputs)."""
    E, k_pad = x.shape
    assert k_pad == packed["k_pad"], "input slab width != packed params"
    out_dim = packed["out_dim"]

    tile_e = _choose_tile(E, tile_e)
    grid = (pl.cdiv(E, tile_e),)       # partial last block: OOB writes dropped

    kernel = functools.partial(
        bond_ffn_kernel, inter_dim=packed["inter_dim"],
        gate_hidden=packed["gate_hidden"], out_dim=out_dim)

    consts = [packed["w_in"], packed["w_mid"], packed["w_out"], packed["aux"]]

    def const_spec(a):
        return pl.BlockSpec(a.shape, lambda i, n=a.ndim: (0,) * n)

    return pl.pallas_call(
        kernel,
        out_shape=jax.ShapeDtypeStruct((E, out_dim), out_dtype),
        grid=grid,
        in_specs=[pl.BlockSpec((tile_e, k_pad), lambda i: (i, 0))]
                 + [const_spec(a) for a in consts],
        out_specs=pl.BlockSpec((tile_e, out_dim), lambda i: (i, 0)),
        compiler_params=pltpu.CompilerParams(
            dimension_semantics=("parallel",),
            # Above v5e's 16 MiB scoped default, below v7x's 64 MiB physical.
            # Raise toward 96 MiB on v6e if sweeping tile_e to 4096-8192.
            vmem_limit_bytes=vmem_limit_bytes),
    )(x, *consts)


def bond_ffn(bond_x, node_x, time, packed, **kw):
    """Module-faithful entry (packs the slab per call; prefer producing the
    packed slab upstream and calling bond_ffn_packed directly)."""
    x = pack_edge_inputs(bond_x, node_x, time, packed["k_pad"])
    return bond_ffn_packed(x, packed, **kw)


# ----------------------------------------------------------------------------
# Module-faithful JAX reference (pure f32)
# ----------------------------------------------------------------------------
def bond_ffn_reference(bond_x, node_x, time, p):
    bond_feat = bond_x @ p["wb"]
    node_feat = node_x @ p["wn"]
    inter = bond_feat * node_feat
    h = _layernorm(inter @ p["w1"] + p["b1"], p["ln1w"], p["ln1b"])
    inter_out = jnp.maximum(h, 0.0) @ p["w2"] + p["b2"]
    cat = jnp.concatenate([bond_x, node_x, time], axis=-1)
    wg1 = jnp.concatenate([p["wgb"], p["wgn"], p["wgt"]], axis=0)
    g = _layernorm(cat @ wg1 + p["bg1"], p["lngw"], p["lngb"])
    gate = jnp.maximum(g, 0.0) @ p["wg2"] + p["bg2"]
    return inter_out * jax.nn.sigmoid(gate)


def init_params(key, bond_dim, node_dim, inter_dim, out_dim, gate_hidden=32):
    ks = jax.random.split(key, 16)

    def w(k, shape, fan_in):
        bound = 1.0 / jnp.sqrt(fan_in)
        return jax.random.uniform(k, shape, jnp.float32, -bound, bound)

    gin = bond_dim + node_dim + 1
    return {
        "wb":  w(ks[0], (bond_dim, inter_dim), bond_dim),
        "wn":  w(ks[1], (node_dim, inter_dim), node_dim),
        "w1":  w(ks[2], (inter_dim, inter_dim), inter_dim),
        "b1":  w(ks[3], (1, inter_dim), inter_dim),
        "ln1w": jnp.ones((1, inter_dim), jnp.float32),
        "ln1b": jnp.zeros((1, inter_dim), jnp.float32),
        "w2":  w(ks[4], (inter_dim, out_dim), inter_dim),
        "b2":  w(ks[5], (1, out_dim), inter_dim),
        "wgb": w(ks[6], (bond_dim, gate_hidden), gin),
        "wgn": w(ks[7], (node_dim, gate_hidden), gin),
        "wgt": w(ks[8], (1, gate_hidden), gin),
        "bg1": w(ks[9], (1, gate_hidden), gin),
        "lngw": jnp.ones((1, gate_hidden), jnp.float32),
        "lngb": jnp.zeros((1, gate_hidden), jnp.float32),
        "wg2": w(ks[10], (gate_hidden, out_dim), gate_hidden),
        "bg2": w(ks[11], (1, out_dim), gate_hidden),
    }


if __name__ == "__main__":
    # Small, module-consistent shapes; E is NOT a multiple of the small tile so
    # the partial-last-block (no jnp.pad) path is exercised.
    E, bond_dim, node_dim, inter_dim = 300, 64, 48, 32
    out_dim = bond_dim  # BondFFN default: out_dim = bond_dim

    key = jax.random.PRNGKey(0)
    k_b, k_n, k_t, k_p = jax.random.split(key, 4)
    bond_x = jax.random.normal(k_b, (E, bond_dim), jnp.float32)
    node_x = jax.random.normal(k_n, (E, node_dim), jnp.float32)
    time = jax.random.uniform(k_t, (E, 1), jnp.float32)

    params = init_params(k_p, bond_dim, node_dim, inter_dim, out_dim)
    ref = bond_ffn_reference(bond_x, node_x, time, params)

    # Pack activations once (upstream-style) and reuse.
    packed_f32 = pack_params(params, matmul_dtype=jnp.float32)
    x_packed = pack_edge_inputs(bond_x, node_x, time, packed_f32["k_pad"])

    # 1) f32 matmul path, small tile -> 3-step grid + partial last block.
    out_f32 = jax.block_until_ready(
        bond_ffn_packed(x_packed, packed_f32, tile_e=128))
    assert out_f32.shape == (E, out_dim)
    assert jnp.allclose(out_f32, ref, rtol=1e-3, atol=1e-3), "f32 path mismatch"

    # 2) performance path: bf16 matmul operands, default (clamped) row tile.
    packed_bf16 = pack_params(params, matmul_dtype=jnp.bfloat16)
    out_bf16 = jax.block_until_ready(bond_ffn_packed(x_packed, packed_bf16))
    assert out_bf16.shape == (E, out_dim)
    assert jnp.allclose(out_bf16, ref, rtol=5e-2, atol=5e-2), "bf16 path mismatch"

    # 3) bf16 output (halves write bytes if downstream tolerates it) via the
    #    module-faithful wrapper.
    out_b16o = jax.block_until_ready(
        bond_ffn(bond_x, node_x, time, packed_bf16, out_dtype=jnp.bfloat16))
    assert out_b16o.shape == (E, out_dim)
    assert jnp.allclose(out_b16o.astype(jnp.float32), ref, rtol=5e-2, atol=5e-2), \
        "bf16-output path mismatch"

    print("KERNEL_OK")
</pallas_src>

<mosaic_0001>
module attributes {stable_mosaic.version = 11 : i64} {
  func.func @bond_ffn_kernel(%arg0: i32, %arg1: memref<128x128xf32, #tpu.memory_space<vmem>>, %arg2: memref<2x128x64xf32, #tpu.memory_space<vmem>>, %arg3: memref<64x64xf32, #tpu.memory_space<vmem>>, %arg4: memref<64x128xf32, #tpu.memory_space<vmem>>, %arg5: memref<4x128xf32, #tpu.memory_space<vmem>>, %arg6: memref<128x64xf32, #tpu.memory_space<vmem>>) attributes {dimension_semantics = [#tpu.dimension_semantics<parallel>], iteration_bounds = array<i64: 3>, scalar_prefetch = 0 : i64, scratch_operands = 0 : i64, tpu.core_type = #tpu.core_type<tc>, window_params = [{transform_indices = @transform_0, window_bounds = array<i64: 128, 128>}, {pipeline_mode = #tpu.pipeline_mode<synchronous>, transform_indices = @transform_1, window_bounds = array<i64: 2, 128, 64>}, {pipeline_mode = #tpu.pipeline_mode<synchronous>, transform_indices = @transform_2, window_bounds = array<i64: 64, 64>}, {pipeline_mode = #tpu.pipeline_mode<synchronous>, transform_indices = @transform_3, window_bounds = array<i64: 64, 128>}, {pipeline_mode = #tpu.pipeline_mode<synchronous>, transform_indices = @transform_4, window_bounds = array<i64: 4, 128>}, {transform_indices = @transform_5, window_bounds = array<i64: 128, 64>}]} {
    %c0 = arith.constant 0 : index
    %c0_0 = arith.constant 0 : index
    %0 = vector.load %arg1[%c0, %c0_0] : memref<128x128xf32, #tpu.memory_space<vmem>>, vector<128x128xf32>
    %c0_1 = arith.constant 0 : index
    %c0_2 = arith.constant 0 : index
    %c0_3 = arith.constant 0 : index
    %1 = vector.load %arg2[%c0_1, %c0_2, %c0_3] : memref<2x128x64xf32, #tpu.memory_space<vmem>>, vector<1x128x64xf32>
    %2 = vector.shape_cast %1 : vector<1x128x64xf32> to vector<128x64xf32>
    %cst = arith.constant dense<0.000000e+00> : vector<128x64xf32>
    %3 = tpu.matmul %0, %2, %cst {dimension_numbers = #tpu.dot_dimension_numbers<[1], [0], [0], [1], [0, 0, 1, 1], [], []>} : vector<128x128xf32>, vector<128x64xf32>, vector<128x64xf32> -> vector<128x64xf32>
    %c1 = arith.constant 1 : index
    %c0_4 = arith.constant 0 : index
    %c0_5 = arith.constant 0 : index
    %4 = vector.load %arg2[%c1, %c0_4, %c0_5] : memref<2x128x64xf32, #tpu.memory_space<vmem>>, vector<1x128x64xf32>
    %5 = vector.shape_cast %4 : vector<1x128x64xf32> to vector<128x64xf32>
    %cst_6 = arith.constant dense<0.000000e+00> : vector<128x64xf32>
    %6 = tpu.matmul %0, %5, %cst_6 {dimension_numbers = #tpu.dot_dimension_numbers<[1], [0], [0], [1], [0, 0, 1, 1], [], []>} : vector<128x128xf32>, vector<128x64xf32>, vector<128x64xf32> -> vector<128x64xf32>
    %7 = tpu.iota {dimensions = array<i32: 1>} : vector<128x64xi32>
    %c32_i32 = arith.constant 32 : i32
    %8 = vector.broadcast %c32_i32 : i32 to vector<128x64xi32>
    %9 = arith.cmpi slt, %7, %8 : vector<128x64xi32>
    %10 = arith.mulf %3, %6 : vector<128x64xf32>
    %11 = arith.addf %3, %6 : vector<128x64xf32>
    %cst_7 = arith.constant 0.000000e+00 : f32
    %12 = vector.broadcast %cst_7 : f32 to vector<128x64xf32>
    %13 = arith.select %9, %12, %11 : vector<128x64xi1>, vector<128x64xf32>
    %c0_8 = arith.constant 0 : index
    %c0_9 = arith.constant 0 : index
    %14 = vector.load %arg5[%c0_8, %c0_9] : memref<4x128xf32, #tpu.memory_space<vmem>>, vector<4x128xf32>
    %15 = vector.extract_strided_slice %14 {offsets = [0, 0], sizes = [1, 64], strides = [1, 1]} : vector<4x128xf32> to vector<1x64xf32>
    %16 = vector.extract_strided_slice %14 {offsets = [1, 0], sizes = [1, 64], strides = [1, 1]} : vector<4x128xf32> to vector<1x64xf32>
    %17 = vector.extract_strided_slice %14 {offsets = [2, 0], sizes = [1, 64], strides = [1, 1]} : vector<4x128xf32> to vector<1x64xf32>
    %18 = vector.extract_strided_slice %14 {offsets = [3, 0], sizes = [1, 128], strides = [1, 1]} : vector<4x128xf32> to vector<1x128xf32>
    %c0_10 = arith.constant 0 : index
    %c0_11 = arith.constant 0 : index
    %19 = vector.load %arg3[%c0_10, %c0_11] : memref<64x64xf32, #tpu.memory_space<vmem>>, vector<64x64xf32>
    %cst_12 = arith.constant dense<0.000000e+00> : vector<128x64xf32>
    %20 = tpu.matmul %10, %19, %cst_12 {dimension_numbers = #tpu.dot_dimension_numbers<[1], [0], [0], [1], [0, 0, 1, 1], [], []>} : vector<128x64xf32>, vector<64x64xf32>, vector<128x64xf32> -> vector<128x64xf32>
    %21 = arith.addf %20, %13 : vector<128x64xf32>
    %22 = vector.broadcast %15 : vector<1x64xf32> to vector<128x64xf32>
    %23 = arith.addf %21, %22 : vector<128x64xf32>
    %cst_13 = arith.constant dense<0.000000e+00> : vector<128xf32>
    %24 = vector.multi_reduction <add>, %23, %cst_13 [1] : vector<128x64xf32> to vector<128xf32>
    %25 = vector.shape_cast %24 : vector<128xf32> to vector<128x1xf32>
    %cst_14 = arith.constant 0.000000e+00 : f32
    %26 = vector.broadcast %cst_14 : f32 to vector<128x64xf32>
    %27 = arith.select %9, %23, %26 : vector<128x64xi1>, vector<128x64xf32>
    %cst_15 = arith.constant dense<0.000000e+00> : vector<128xf32>
    %28 = vector.multi_reduction <add>, %27, %cst_15 [1] : vector<128x64xf32> to vector<128xf32>
    %29 = vector.shape_cast %28 : vector<128xf32> to vector<128x1xf32>
    %cst_16 = arith.constant 3.125000e-02 : f32
    %30 = vector.broadcast %cst_16 : f32 to vector<128x1xf32>
    %31 = arith.mulf %29, %30 : vector<128x1xf32>
    %32 = arith.subf %25, %29 : vector<128x1xf32>
    %cst_17 = arith.constant 3.125000e-02 : f32
    %33 = vector.broadcast %cst_17 : f32 to vector<128x1xf32>
    %34 = arith.mulf %32, %33 : vector<128x1xf32>
    %35 = vector.shape_cast %31 : vector<128x1xf32> to vector<128x1xf32>
    %36 = vector.broadcast %35 : vector<128x1xf32> to vector<128x64xf32>
    %37 = vector.shape_cast %34 : vector<128x1xf32> to vector<128x1xf32>
    %38 = vector.broadcast %37 : vector<128x1xf32> to vector<128x64xf32>
    %39 = arith.select %9, %36, %38 : vector<128x64xi1>, vector<128x64xf32>
    %40 = arith.subf %23, %39 : vector<128x64xf32>
    %41 = arith.mulf %40, %40 : vector<128x64xf32>
    %cst_18 = arith.constant dense<0.000000e+00> : vector<128xf32>
    %42 = vector.multi_reduction <add>, %41, %cst_18 [1] : vector<128x64xf32> to vector<128xf32>
    %43 = vector.shape_cast %42 : vector<128xf32> to vector<128x1xf32>
    %cst_19 = arith.constant 0.000000e+00 : f32
    %44 = vector.broadcast %cst_19 : f32 to vector<128x64xf32>
    %45 = arith.select %9, %41, %44 : vector<128x64xi1>, vector<128x64xf32>
    %cst_20 = arith.constant dense<0.000000e+00> : vector<128xf32>
    %46 = vector.multi_reduction <add>, %45, %cst_20 [1] : vector<128x64xf32> to vector<128xf32>
    %47 = vector.shape_cast %46 : vector<128xf32> to vector<128x1xf32>
    %cst_21 = arith.constant 3.125000e-02 : f32
    %48 = vector.broadcast %cst_21 : f32 to vector<128x1xf32>
    %49 = arith.mulf %47, %48 : vector<128x1xf32>
    %cst_22 = arith.constant 9.99999974E-6 : f32
    %50 = vector.broadcast %cst_22 : f32 to vector<128x1xf32>
    %51 = arith.addf %49, %50 : vector<128x1xf32>
    %52 = math.rsqrt %51 : vector<128x1xf32>
    %53 = arith.subf %43, %47 : vector<128x1xf32>
    %cst_23 = arith.constant 3.125000e-02 : f32
    %54 = vector.broadcast %cst_23 : f32 to vector<128x1xf32>
    %55 = arith.mulf %53, %54 : vector<128x1xf32>
    %cst_24 = arith.constant 9.99999974E-6 : f32
    %56 = vector.broadcast %cst_24 : f32 to vector<128x1xf32>
    %57 = arith.addf %55, %56 : vector<128x1xf32>
    %58 = math.rsqrt %57 : vector<128x1xf32>
    %59 = vector.shape_cast %52 : vector<128x1xf32> to vector<128x1xf32>
    %60 = vector.broadcast %59 : vector<128x1xf32> to vector<128x64xf32>
    %61 = vector.shape_cast %58 : vector<128x1xf32> to vector<128x1xf32>
    %62 = vector.broadcast %61 : vector<128x1xf32> to vector<128x64xf32>
    %63 = arith.select %9, %60, %62 : vector<128x64xi1>, vector<128x64xf32>
    %64 = arith.mulf %40, %63 : vector<128x64xf32>
    %65 = vector.broadcast %16 : vector<1x64xf32> to vector<128x64xf32>
    %66 = arith.mulf %64, %65 : vector<128x64xf32>
    %67 = vector.broadcast %17 : vector<1x64xf32> to vector<128x64xf32>
    %68 = arith.addf %66, %67 : vector<128x64xf32>
    %cst_25 = arith.constant 0.000000e+00 : f32
    %69 = vector.broadcast %cst_25 : f32 to vector<128x64xf32>
    %70 = arith.maximumf %68, %69 : vector<128x64xf32>
    %c0_26 = arith.constant 0 : index
    %c0_27 = arith.constant 0 : index
    %71 = vector.load %arg4[%c0_26, %c0_27] : memref<64x128xf32, #tpu.memory_space<vmem>>, vector<64x128xf32>
    %cst_28 = arith.constant dense<0.000000e+00> : vector<128x128xf32>
    %72 = tpu.matmul %70, %71, %cst_28 {dimension_numbers = #tpu.dot_dimension_numbers<[1], [0], [0], [1], [0, 0, 1, 1], [], []>} : vector<128x64xf32>, vector<64x128xf32>, vector<128x128xf32> -> vector<128x128xf32>
    %73 = vector.broadcast %18 : vector<1x128xf32> to vector<128x128xf32>
    %74 = arith.addf %72, %73 : vector<128x128xf32>
    %c64_i32 = arith.constant 64 : i32
    %75 = tpu.dynamic_rotate %74 by %c64_i32 dim 1 : vector<128x128xf32>, i32 -> vector<128x128xf32>
    %76 = arith.negf %75 : vector<128x128xf32>
    %77 = math.exp %76 : vector<128x128xf32>
    %cst_29 = arith.constant 1.000000e+00 : f32
    %78 = vector.broadcast %cst_29 : f32 to vector<128x128xf32>
    %79 = arith.addf %78, %77 : vector<128x128xf32>
    %80 = arith.divf %78, %79 : vector<128x128xf32>
    %81 = arith.mulf %74, %80 : vector<128x128xf32>
    %82 = vector.extract_strided_slice %81 {offsets = [0, 0], sizes = [128, 64], strides = [1, 1]} : vector<128x128xf32> to vector<128x64xf32>
    %c0_30 = arith.constant 0 : index
    %c0_31 = arith.constant 0 : index
    %83 = vector.load %arg6[%c0_30, %c0_31] : memref<128x64xf32, #tpu.memory_space<vmem>>, vector<128x64xf32>
    tpu.vector_store %arg6[%c0_30, %c0_31], %82 {strides = array<i32>} : memref<128x64xf32, #tpu.memory_space<vmem>>, vector<128x64xf32>,
    return
  }
  func.func @transform_0(%arg0: i32) -> (i32, i32) {
    %c0_i32 = arith.constant 0 : i32
    %c0_i32_0 = arith.constant 0 : i32
    return %arg0, %c0_i32 : i32, i32
  }
  func.func @transform_1(%arg0: i32) -> (i32, i32, i32) {
    %c0_i32 = arith.constant 0 : i32
    %c0_i32_0 = arith.constant 0 : i32
    %c0_i32_1 = arith.constant 0 : i32
    %c0_i32_2 = arith.constant 0 : i32
    return %c0_i32, %c0_i32_0, %c0_i32_1 : i32, i32, i32
  }
  func.func @transform_2(%arg0: i32) -> (i32, i32) {
    %c0_i32 = arith.constant 0 : i32
    %c0_i32_0 = arith.constant 0 : i32
    %c0_i32_1 = arith.constant 0 : i32
    return %c0_i32, %c0_i32_0 : i32, i32
  }
  func.func @transform_3(%arg0: i32) -> (i32, i32) {
    %c0_i32 = arith.constant 0 : i32
    %c0_i32_0 = arith.constant 0 : i32
    %c0_i32_1 = arith.constant 0 : i32
    return %c0_i32, %c0_i32_0 : i32, i32
  }
  func.func @transform_4(%arg0: i32) -> (i32, i32) {
    %c0_i32 = arith.constant 0 : i32
    %c0_i32_0 = arith.constant 0 : i32
    %c0_i32_1 = arith.constant 0 : i32
    return %c0_i32, %c0_i32_0 : i32, i32
  }
  func.func @transform_5(%arg0: i32) -> (i32, i32) {
    %c0_i32 = arith.constant 0 : i32
    %c0_i32_0 = arith.constant 0 : i32
    return %arg0, %c0_i32 : i32, i32
  }
}

</mosaic_0001>

<bundles_post_ra>
// kernel: tpu_custom_call.1
= control target key start
LH: loop header
LB: loop body
LE: loop exit
PB: predicated region body
PF: predicated region fallthrough
CT: control target
= control target key end

     0   :  { %10 = vsyncpa [#allocation3], 0  ;;  %s2924_s18 = smov 0   ;;  %s2926_s19 = smov 0   ;;  %s3887_s0 = inlined_call_operand.vmem [shape: f32[300,128], index: 0, kind: input, shape index: {}]   ;;  %s3888_s1 = inlined_call_operand.vmem [shape: f32[2,128,64], index: 1, kind: input, shape index: {}]   ;;  %s3889_s2 = inlined_call_operand.vmem [shape: f32[64,64], index: 2, kind: input, shape index: {}]   ;;  %s3890_s3 = inlined_call_operand.hbm [shape: f32[64,128], index: 3, kind: input, shape index: {}]   ;;  %s3891_s4 = inlined_call_operand.vmem [shape: f32[4,128], index: 4, kind: input, shape index: {}]   ;;  %s3892_s5 = inlined_call_operand.vmem [shape: f32[300,64], index: 5, kind: output, shape index: {}]  }
   0x1   :  { %s2928_s20 = smov 0  }
   0x2 LB: > { %s2937_s21 = sadd.s32 4294967295, %s2856_s20   ;;  %s2939_s22 = sadd.s32 1, %s2856_s20   ;;  %s2856_s20 = sphi %s2928_s20, %s3907_s20   ;;  %s2852_s19 = sphi %s2926_s19, %s3906_s19   ;;  %s2848_s18 = sphi %s2924_s18, %s3905_s18  }
   0x3   : > { %s130_s23 = ssub.s32 %s2856_s20, %s2939_s22  ;;  %s133_s24 = sadd.s32 1, %s2852_s19 }
   0x4   : > { %p131_p0 = scmp.eq.s32.totalorder %s130_s23, 0  ;;  %p143_p1 = scmp.ne.s32.totalorder %s2852_s19, %s2848_s18 }
   0x5   : > { %p144_p2 = scmp.eq.s32.totalorder %s2937_s21, 2  ;;  %p2047_p3 = scmp.ge.s32.totalorder %s2856_s20, 1 }
   0x6   : > { %s2947_s25 = scalar_select %p131_p0, %s2852_s19, %s133_s24  }
   0x7   : > { %p2949_p4 = por %p144_p2, %p143_p1  ;;  %p157_p5 = scmp.lt.s32.totalorder %s2856_s20, 4 }
   0x8   : > { %p3893_p6 = scmp.eq.s32.totalorder %s2937_s21, 0  ;;  %s2890_s28 = smov [#allocation2]  }
   0x9   : > { %s3895_s26 = scalar_select %p2949_p4, 1, 0 }
   0xa   : > { %p2954_p7 = pnand %p2047_p3, %p157_p5  ;;  %s175_s29 = sshll.u32 %s2890_s28, 4  ;;  %s176_s29 = int_to_ptr.vmem [resolvable:$true] %s175_s29 }
   0xb   : > { %s2770_s8 = scalar_lea.hbm %s3890_s3, 1024 }
   0xc   : > { %s3896_s27 = scalar_select %p2954_p7, 1, 0 }
   0xd   : > { %p2543_p8 = pneg %p2954_p7  ;;  %p2771_p10 = scmp.ne.s32.totalorder %s3890_s3, %s2770_s8 }
   0xe   : > { %p2777_p0 = scmp.lt.u32.totalorder %s2770_s8, %s3890_s3 }
   0xf   : > { %p2962_p9 = pnand %p3893_p6, %p2543_p8 }
  0x11   : > { %p2772_p11 = pneg %p2962_p9 }
  0x13   : > { %p2773_p12 = pnand %p2772_p11, %p2771_p10 }
  0x15   : > { %p2774_p13 = pneg %p2773_p12 }
  0x17   : > { %p2779_p1 = pnand %p2777_p0, %p2774_p13 }
  0x19   : > { %2782 = shalt.err (!%p2779_p1)
}
  0x1a   : > { %s2783_s13 = scalar_lea.vmem %s176_s29, 1024  ;;  %p2791_p8 = scmp.lt.s32.totalorder %s176_s29, %s176_s29 }
  0x1b   : > { %p2784_p2 = scmp.ne.s32.totalorder %s176_s29, %s2783_s13  ;;  %p2792_p6 = scmp.lt.s32.totalorder %s2783_s13, %s2783_s13 }
  0x1d   : > { %p2786_p3 = pnand %p2784_p2, %p2772_p11  ;;  %p2793_p4 = por %p2792_p6, %p2791_p8 }
  0x1f   : > { %p2787_p5 = pneg %p2786_p3 }
  0x21   : > { %p2794_p7 = pnand %p2793_p4, %p2787_p5 }
  0x23   : > { %2797 = shalt.err (!%p2794_p7)
}
  0x24   : > { %s2891_s14 = smov 128   ;;  %s2892_s15 = smov 8  }
  0x25   : > { %2546 = dma.hbm_to_vmem [thread:$0]  (!%p2962_p9), %s3890_s3, 1024, %s176_s29, [#allocation3], %s2891_s14, %s2891_s14, %s2892_s15  }
  0x26   : > { %p3898_p10 = scmp.ne.s32.totalorder %s3896_s27, 0 }
  0x27   : > { %p3899_p12 = scmp.eq.s32.totalorder (!%p3898_p10), %s2937_s21, 0 }
  0x28   : > { %211 = sbr.rel (%p3898_p10) target bundleno = 1311 (0x51f), region = 40 }
  0x2f   : > { %2843 = dma.done.wait (%p3899_p12), [#allocation3], 1024   ;;  %p3900_p11 = pmov %p3899_p12 }
  0x30   : > { %s2989_s20 = sshll.u32 %s2937_s21, 4  ;;  %v277_v0 = vld [vmem:[%s3888_s1] sm:$0xff]  ;;  %v278_v1 = vld [vmem:[%s3888_s1 + $0x8] sm:$0xff]  ;;  %v279_v5 = vld [vmem:[%s3888_s1 + $0x10] sm:$0xff]  ;;  %vm660_vm0 = vcmask 523264   ;;  %s2893_s24 = smov 64  }
  0x31   : > { %2845 = vsyncadd (%p3900_p11), [#allocation3], 4294966272  ;;  %p247_p4 = scmp.lt.s32.totalorder %s2989_s20, 37  ;;  %v2055_v2 = vld [vmem:[%s3888_s1 + $0x80] sm:$0xff]  ;;  %v2443_v3 = vpack.c.bf16 %v278_v1, %v277_v0  ;;  %v2056_v4 = vld [vmem:[%s3888_s1 + $0x88] sm:$0xff]  ;;  %s239_s28 = sand.u32 1, %s2848_s18  }
  0x32   : > { %v280_v6 = vld [vmem:[%s3888_s1 + $0x18] sm:$0xff]  ;;  %v2475_v7 = vpack.c.bf16 %v2056_v4, %v2055_v2  ;;  %v2057_v9 = vld [vmem:[%s3888_s1 + $0x90] sm:$0xff]  ;;  %v281_v11 = vld [vmem:[%s3888_s1 + $0x20] sm:$0xff]  ;;  %s2052_s29 = sshll.u32 %s239_s28, 7  ;;  %p3901_p6 = scmp.ne.s32.totalorder %s3895_s26, 0 }
  0x33   : > { %s248_s6 = scalar_select %p247_p4, %s2989_s20, 37  ;;  %v2447_v8 = vpack.c.bf16 %v280_v6, %v279_v5  ;;  %v2058_v10 = vld [vmem:[%s3888_s1 + $0x98] sm:$0xff]  ;;  %2444 = vmatprep.subr.bf16.mxu0 %v2443_v3  ;;  %v282_v13 = vld [vmem:[%s3888_s1 + $0x28] sm:$0xff]  ;;  %v2059_v14 = vld [vmem:[%s3888_s1 + $0xa0] sm:$0xff] }
  0x34   : > { %v2479_v12 = vpack.c.bf16 %v2058_v10, %v2057_v9  ;;  %v2060_v15 = vld [vmem:[%s3888_s1 + $0xa8] sm:$0xff]  ;;  %2476 = vmatprep.subr.bf16.mxu1 %v2475_v7  ;;  %2446 = vmatpush3.bf16.msra.mxu0 %v2443_v3  ;;  %v2451_v16 = vpack.c.bf16 %v282_v13, %v281_v11  ;;  %v283_v18 = vld [vmem:[%s3888_s1 + $0x30] sm:$0xff]  ;;  %v284_v19 = vld [vmem:[%s3888_s1 + $0x38] sm:$0xff]  ;;  %s3739_s18 = scalar_lea.vmem [#allocation4], %s2052_s29   ;;  %s1767_s27 = ssub.s32 (%p3901_p6), 38, %s2989_s20 }
  0x35   : > { %s2054_s8 = sshll.u32 %s248_s6, 3  ;;  %2478 = vmatpush3.bf16.msra.mxu1 %v2475_v7  ;;  %2448 = vmatprep.subr.bf16.mxu0 %v2447_v8  ;;  %v2483_v17 = vpack.c.bf16 %v2060_v15, %v2059_v14  ;;  %v2061_v20 = vld [vmem:[%s3888_s1 + $0xb0] sm:$0xff]  ;;  %v2062_v21 = vld [vmem:[%s3888_s1 + $0xb8] sm:$0xff]  ;;  %v2455_v22 = vpack.c.bf16 %v284_v19, %v283_v18  ;;  %v285_v24 = vld [vmem:[%s3888_s1 + $0x40] sm:$0xff]  ;;  %s2136_s30 = sshll.u32 (%p3901_p6), %s2937_s21, 7 }
  0x36   : > { %2480 = vmatprep.subr.bf16.mxu1 %v2479_v12  ;;  %s3044_s23 = scalar_lea.vmem %s3887_s0, %s2054_s8  ;;  %v2487_v23 = vpack.c.bf16 %v2062_v21, %v2061_v20  ;;  %v286_v25 = vld [vmem:[%s3888_s1 + $0x48] sm:$0xff]  ;;  %v2063_v27 = vld [vmem:[%s3888_s1 + $0xc0] sm:$0xff]  ;;  %v287_v31 = vld [vmem:[%s3888_s1 + $0x50] sm:$0xff]  ;;  %p1768_p7 = scmp.lt.s32.totalorder (%p3901_p6), %s1767_s27, 16 }
  0x37   : > { %v261_v26 = vld [vmem:[%s3044_s23] sm:$0xff]  ;;  %v2064_v28 = vld [vmem:[%s3888_s1 + $0xc8] sm:$0xff]  ;;  %v2459_v29 = vpack.c.bf16 %v286_v25, %v285_v24  ;;  %v288_v32 = vld [vmem:[%s3888_s1 + $0x58] sm:$0xff]  ;;  %s3794_s9 = scalar_lea.vmem (%p3901_p6), %s3892_s5, %s2136_s30  }
  0x38   : > { %2450 = vmatpush3.bf16.msra.mxu0 %v2447_v8  ;;  %2283 = vmatprep.mubr.f32.mxu0 %v261_v26  ;;  %v2491_v30 = vpack.c.bf16 %v2064_v28, %v2063_v27  ;;  %v2065_v33 = vld [vmem:[%s3888_s1 + $0xd0] sm:$0xff]  ;;  %v2066_v34 = vld [vmem:[%s3888_s1 + $0xd8] sm:$0xff]  ;;  %v2463_v35 = vpack.c.bf16 %v288_v32, %v287_v31  ;;  %v289_v37 = vld [vmem:[%s3888_s1 + $0x60] sm:$0xff] }
  0x39   : > { %2482 = vmatpush3.bf16.msra.mxu1 %v2479_v12  ;;  %2452 = vmatprep.subr.bf16.mxu0 %v2451_v16  ;;  %v2495_v36 = vpack.c.bf16 %v2066_v34, %v2065_v33  ;;  %v290_v38 = vld [vmem:[%s3888_s1 + $0x68] sm:$0xff]  ;;  %v2067_v39 = vld [vmem:[%s3888_s1 + $0xe0] sm:$0xff]  ;;  %v291_v43 = vld [vmem:[%s3888_s1 + $0x70] sm:$0xff] }
  0x3a   : > { %2484 = vmatprep.subr.bf16.mxu1 %v2483_v17  ;;  %2339 = vmatprep.mubr.f32.mxu1 %v261_v26  ;;  %v2068_v40 = vld [vmem:[%s3888_s1 + $0xe8] sm:$0xff]  ;;  %v2467_v41 = vpack.c.bf16 %v290_v38, %v289_v37  ;;  %v292_v44 = vld [vmem:[%s3888_s1 + $0x78] sm:$0xff]  ;;  %v2069_v45 = vld [vmem:[%s3888_s1 + $0xf0] sm:$0xff] }
  0x3b   : > { %v2499_v42 = vpack.c.bf16 %v2068_v40, %v2067_v39  ;;  %v2070_v46 = vld [vmem:[%s3888_s1 + $0xf8] sm:$0xff]  ;;  %v2471_v47 = vpack.c.bf16 %v292_v44, %v291_v43  ;;  %v652_v49 = vld [vmem:[%s3889_s2] sm:$0xff]  ;;  %v653_v50 = vld [vmem:[%s3889_s2 + $0x8] sm:$0xff] }
  0x3c   : > { %2454 = vmatpush3.bf16.msra.mxu0 %v2451_v16  ;;  %v2503_v48 = vpack.c.bf16 %v2070_v46, %v2069_v45  ;;  %v2507_v51 = vpack.c.bf16 %v653_v50, %v652_v49  ;;  %v654_v52 = vld [vmem:[%s3889_s2 + $0x10] sm:$0xff]  ;;  %v655_v53 = vld [vmem:[%s3889_s2 + $0x18] sm:$0xff]  ;;  %v262_v54 = vld [vmem:[%s3044_s23 + $0x8] sm:$0xff] }
  0x3d   : > { %2486 = vmatpush3.bf16.msra.mxu1 %v2483_v17  ;;  %2456 = vmatprep.subr.bf16.mxu0 %v2455_v22  ;;  %v263_v55 = vld [vmem:[%s3044_s23 + $0x10] sm:$0xff]  ;;  %v2511_v56 = vpack.c.bf16 %v655_v53, %v654_v52  ;;  %v656_v57 = vld [vmem:[%s3889_s2 + $0x20] sm:$0xff]  ;;  %v657_v58 = vld [vmem:[%s3889_s2 + $0x28] sm:$0xff] }
  0x3e   : > { %2488 = vmatprep.subr.bf16.mxu1 %v2487_v23  ;;  %v264_v59 = vld [vmem:[%s3044_s23 + $0x18] sm:$0xff]  ;;  %v265_v60 = vld [vmem:[%s3044_s23 + $0x20] sm:$0xff]  ;;  %v2515_v61 = vpack.c.bf16 %v657_v58, %v656_v57  ;;  %v658_v62 = vld [vmem:[%s3889_s2 + $0x30] sm:$0xff] }
  0x3f   : > { %v659_v63 = vld [vmem:[%s3889_s2 + $0x38] sm:$0xff]  ;;  %v266_v0 = vld [vmem:[%s3044_s23 + $0x28] sm:$0xff]  ;;  %v267_v1 = vld [vmem:[%s3044_s23 + $0x30] sm:$0xff] }
  0x40   : > { %2458 = vmatpush3.bf16.msra.mxu0 %v2455_v22  ;;  %v2519_v2 = vpack.c.bf16 %v659_v63, %v658_v62  ;;  %v268_v3 = vld [vmem:[%s3044_s23 + $0x38] sm:$0xff]  ;;  %v269_v4 = vld [vmem:[%s3044_s23 + $0x40] sm:$0xff]  ;;  %v270_v5 = vld [vmem:[%s3044_s23 + $0x48] sm:$0xff] }
  0x41   : > { %2490 = vmatpush3.bf16.msra.mxu1 %v2487_v23  ;;  %2460 = vmatprep.subr.bf16.mxu0 %v2459_v29  ;;  %v271_v6 = vld [vmem:[%s3044_s23 + $0x50] sm:$0xff]  ;;  %v272_v7 = vld [vmem:[%s3044_s23 + $0x58] sm:$0xff]  ;;  %v273_v8 = vld [vmem:[%s3044_s23 + $0x60] sm:$0xff] }
  0x42   : > { %2492 = vmatprep.subr.bf16.mxu1 %v2491_v30  ;;  %v274_v9 = vld [vmem:[%s3044_s23 + $0x68] sm:$0xff]  ;;  %v275_v10 = vld [vmem:[%s3044_s23 + $0x70] sm:$0xff]  ;;  %v276_v11 = vld [vmem:[%s3044_s23 + $0x78] sm:$0xff] }
  0x44   : > { %2462 = vmatpush3.bf16.msra.mxu0 %v2459_v29 }
  0x45   : > { %2494 = vmatpush3.bf16.msra.mxu1 %v2491_v30  ;;  %2464 = vmatprep.subr.bf16.mxu0 %v2463_v35 }
  0x46   : > { %2496 = vmatprep.subr.bf16.mxu1 %v2495_v36 }
  0x48   : > { %2466 = vmatpush3.bf16.msra.mxu0 %v2463_v35 }
  0x49   : > { %2498 = vmatpush3.bf16.msra.mxu1 %v2495_v36  ;;  %2468 = vmatprep.subr.bf16.mxu0 %v2467_v41 }
  0x4a   : > { %2500 = vmatprep.subr.bf16.mxu1 %v2499_v42 }
  0x4c   : > { %2470 = vmatpush3.bf16.msra.mxu0 %v2467_v41 }
  0x4d   : > { %2502 = vmatpush3.bf16.msra.mxu1 %v2499_v42  ;;  %2472 = vmatprep.subr.bf16.mxu0 %v2471_v47 }
  0x4e   : > { %2504 = vmatprep.subr.bf16.mxu1 %v2503_v48 }
  0x50   : > { %2474 = vmatpush3.bf16.msra.mxu0 %v2471_v47 }
  0x51   : > { %2506 = vmatpush3.bf16.msra.mxu1 %v2503_v48  ;;  %2508 = vmatprep.subr.bf16.mxu0 %v2507_v51 }
  0x53   : > { %2284 = vmatmul.mubr.f32.vlgmr.msra.gmra.mrb[0].mxu0 %v262_v54 }
  0x54   : > { %2340 = vmatmul.mubr.f32.vlgmr.msra.gmra.mrb[0].mxu1 %v262_v54  ;;  %2286 = vmatprep.mubr.f32.mxu0 %v263_v55 }
  0x55   : > { %2342 = vmatprep.mubr.f32.mxu1 %v263_v55  ;;  %2510 = vmatpush3.bf16.msra.mxu0 %v2507_v51 }
  0x56   : > { %2512 = vmatprep.subr.bf16.mxu0 %v2511_v56 }
  0x57   : > { %2287 = vmatmul.mubr.f32.gmra.mrb[2].mxu0 %v264_v59 }
  0x58   : > { %2343 = vmatmul.mubr.f32.gmra.mrb[2].mxu1 %v264_v59  ;;  %2289 = vmatprep.mubr.f32.mxu0 %v265_v60 }
  0x59   : > { %2345 = vmatprep.mubr.f32.mxu1 %v265_v60  ;;  %2514 = vmatpush3.bf16.msra.mxu0 %v2511_v56 }
  0x5a   : > { %2516 = vmatprep.subr.bf16.mxu0 %v2515_v61 }
  0x5b   : > { %2290 = vmatmul.mubr.f32.gmra.mrb[4].mxu0 %v266_v0 }
  0x5c   : > { %2346 = vmatmul.mubr.f32.gmra.mrb[4].mxu1 %v266_v0  ;;  %2292 = vmatprep.mubr.f32.mxu0 %v267_v1 }
  0x5d   : > { %2348 = vmatprep.mubr.f32.mxu1 %v267_v1  ;;  %2518 = vmatpush3.bf16.msra.mxu0 %v2515_v61 }
  0x5e   : > { %2520 = vmatprep.subr.bf16.mxu0 %v2519_v2 }
  0x5f   : > { %2293 = vmatmul.mubr.f32.gmra.mrb[6].mxu0 %v268_v3 }
  0x60   : > { %2349 = vmatmul.mubr.f32.gmra.mrb[6].mxu1 %v268_v3  ;;  %2295 = vmatprep.mubr.f32.mxu0 %v269_v4 }
  0x61   : > { %2351 = vmatprep.mubr.f32.mxu1 %v269_v4  ;;  %2522 = vmatpush3.bf16.msra.mxu0 %v2519_v2 }
  0x63   : > { %2296 = vmatmul.mubr.f32.gmra.mrb[8].mxu0 %v270_v5 }
  0x64   : > { %2352 = vmatmul.mubr.f32.gmra.mrb[8].mxu1 %v270_v5  ;;  %2298 = vmatprep.mubr.f32.mxu0 %v271_v6 }
  0x65   : > { %2354 = vmatprep.mubr.f32.mxu1 %v271_v6 }
  0x67   : > { %2299 = vmatmul.mubr.f32.gmra.mrb[10].mxu0 %v272_v7 }
  0x68   : > { %2355 = vmatmul.mubr.f32.gmra.mrb[10].mxu1 %v272_v7  ;;  %2301 = vmatprep.mubr.f32.mxu0 %v273_v8 }
  0x69   : > { %2357 = vmatprep.mubr.f32.mxu1 %v273_v8 }
  0x6b   : > { %2302 = vmatmul.mubr.f32.gmra.mrb[12].mxu0 %v274_v9 }
  0x6c   : > { %2358 = vmatmul.mubr.f32.gmra.mrb[12].mxu1 %v274_v9  ;;  %2304 = vmatprep.mubr.f32.mxu0 %v275_v10 }
  0x6d   : > { %2360 = vmatprep.mubr.f32.mxu1 %v275_v10 }
  0x6f   : > { %2305 = vmatmul.mubr.f32.gmra.mrb[14].mxu0 %v276_v11 }
  0x70   : > { %2361 = vmatmul.mubr.f32.gmra.mrb[14].mxu1 %v276_v11 }
 0x126   : > { %v2285_v12 = vpop.f32.mrb[0].mxu0 }
 0x127   : > { %v2341_v13 = vpop.f32.mrb[0].mxu1  ;;  %v359_v14 = vpop.f32.mrb[1].mxu0 }
 0x128   : > { %v604_v15 = vmul.f32 %v2341_v13, %v2285_v12  ;;  %v3134_v16 = vadd.f32 %v2341_v13, %v2285_v12  ;;  %v521_v17 = vpop.f32.mrb[1].mxu1  ;;  %v600_v12 = vlaneseq }
 0x129   : > { %v603_v18 = vmul.f32 %v521_v17, %v359_v14  ;;  %v3136_v19 = vadd.f32 %v521_v17, %v359_v14  ;;  %v3190_v17 = vld [vmem:[%s3891_s4] sm:$0xf] }
 0x12a   : > { %v2288_v20 = vpop.f32.mrb[2].mxu0  ;;  %v3182_v13 = vshrl.u32 %v600_v12, 7  ;;  %v3184_v14 = vand.u32 127, %v600_v12 }
 0x12b   : > { %v2344_v21 = vpop.f32.mrb[2].mxu1  ;;  %2379 = vmatprep.mubr.msk.f32.mxu0 %vm660_vm0, %v603_v18  ;;  %v369_v22 = vpop.f32.mrb[3].mxu0 }
 0x12c   : > { %v606_v23 = vmul.f32 %v2344_v21, %v2288_v20  ;;  %v3139_v24 = vadd.f32 %v2344_v21, %v2288_v20  ;;  %v531_v25 = vpop.f32.mrb[3].mxu1  ;;  %2380 = vmatmul.mubr.msk.f32.vlgmr.msra.gmra.mrb[16].mxu0 %vm660_vm0, %v604_v15  ;;  %v856_v15 = vsub.s32 0, %v3182_v13  ;;  %vm602_vm1 = vcmp.lt.s32.totalorder %v3184_v14, 32 }
 0x12d   : > { %v605_v26 = vmul.f32 %v531_v25, %v369_v22  ;;  %v3142_v27 = vadd.f32 %v531_v25, %v369_v22  ;;  %v636_v20 = vsel %vm602_vm1, 0.0, %v3134_v16  ;;  %v1404_v14 = vsub.s32 3, %v3182_v13 }
 0x12e   : > { %v2291_v28 = vpop.f32.mrb[4].mxu0  ;;  %v3194_v18 = vrot.slane %v3190_v17, %v856_v15 }
 0x12f   : > { %v2347_v29 = vpop.f32.mrb[4].mxu1  ;;  %2382 = vmatprep.mubr.msk.f32.mxu0 %vm660_vm0, %v605_v26  ;;  %v379_v30 = vpop.f32.mrb[5].mxu0 }
 0x130   : > { %v608_v31 = vmul.f32 %v2347_v29, %v2291_v28  ;;  %v3145_v32 = vadd.f32 %v2347_v29, %v2291_v28  ;;  %v541_v33 = vpop.f32.mrb[5].mxu1  ;;  %2383 = vmatmul.mubr.msk.f32.gmra.mrb[18].mxu0 %vm660_vm0, %v606_v23  ;;  %v635_v23 = vsel %vm602_vm1, 0.0, %v3136_v19 }
 0x131   : > { %v607_v34 = vmul.f32 %v541_v33, %v379_v30  ;;  %v3148_v35 = vadd.f32 %v541_v33, %v379_v30  ;;  %v638_v30 = vsel %vm602_vm1, 0.0, %v3139_v24  ;;  %v637_v33 = vsel %vm602_vm1, 0.0, %v3142_v27 }
 0x132   : > { %v2294_v36 = vpop.f32.mrb[6].mxu0 }
 0x133   : > { %v2350_v37 = vpop.f32.mrb[6].mxu1  ;;  %2385 = vmatprep.mubr.msk.f32.mxu0 %vm660_vm0, %v607_v34  ;;  %v389_v38 = vpop.f32.mrb[7].mxu0 }
 0x134   : > { %v610_v39 = vmul.f32 %v2350_v37, %v2294_v36  ;;  %v3151_v40 = vadd.f32 %v2350_v37, %v2294_v36  ;;  %v551_v41 = vpop.f32.mrb[7].mxu1  ;;  %2386 = vmatmul.mubr.msk.f32.gmra.mrb[20].mxu0 %vm660_vm0, %v608_v31 }
 0x135   : > { %v609_v42 = vmul.f32 %v551_v41, %v389_v38  ;;  %v3154_v43 = vadd.f32 %v551_v41, %v389_v38 }
 0x136   : > { %v2297_v44 = vpop.f32.mrb[8].mxu0 }
 0x137   : > { %v2353_v45 = vpop.f32.mrb[8].mxu1  ;;  %2388 = vmatprep.mubr.msk.f32.mxu0 %vm660_vm0, %v609_v42  ;;  %v399_v46 = vpop.f32.mrb[9].mxu0 }
 0x138   : > { %v612_v47 = vmul.f32 %v2353_v45, %v2297_v44  ;;  %v3157_v48 = vadd.f32 %v2353_v45, %v2297_v44  ;;  %v561_v49 = vpop.f32.mrb[9].mxu1  ;;  %2389 = vmatmul.mubr.msk.f32.gmra.mrb[22].mxu0 %vm660_vm0, %v610_v39  ;;  %v640_v39 = vsel %vm602_vm1, 0.0, %v3145_v32  ;;  %v639_v44 = vsel %vm602_vm1, 0.0, %v3148_v35 }
 0x139   : > { %v611_v50 = vmul.f32 %v561_v49, %v399_v46  ;;  %v3160_v51 = vadd.f32 %v561_v49, %v399_v46 }
 0x13a   : > { %v2300_v52 = vpop.f32.mrb[10].mxu0 }
 0x13b   : > { %v2356_v53 = vpop.f32.mrb[10].mxu1  ;;  %2391 = vmatprep.mubr.msk.f32.mxu0 %vm660_vm0, %v611_v50  ;;  %v409_v54 = vpop.f32.mrb[11].mxu0 }
 0x13c   : > { %v614_v55 = vmul.f32 %v2356_v53, %v2300_v52  ;;  %v3163_v56 = vadd.f32 %v2356_v53, %v2300_v52  ;;  %v571_v57 = vpop.f32.mrb[11].mxu1  ;;  %2392 = vmatmul.mubr.msk.f32.gmra.mrb[24].mxu0 %vm660_vm0, %v612_v47  ;;  %v642_v52 = vsel %vm602_vm1, 0.0, %v3151_v40 }
 0x13d   : > { %v613_v58 = vmul.f32 %v571_v57, %v409_v54  ;;  %v3166_v59 = vadd.f32 %v571_v57, %v409_v54  ;;  %v641_v54 = vsel %vm602_vm1, 0.0, %v3154_v43  ;;  %v644_v43 = vsel %vm602_vm1, 0.0, %v3157_v48 }
 0x13e   : > { %v2303_v60 = vpop.f32.mrb[12].mxu0 }
 0x13f   : > { %v2359_v61 = vpop.f32.mrb[12].mxu1  ;;  %2394 = vmatprep.mubr.msk.f32.mxu0 %vm660_vm0, %v613_v58  ;;  %v419_v62 = vpop.f32.mrb[13].mxu0  ;;  %v645_v12 = vsel %vm602_vm1, 0.0, %v3166_v59 }
 0x140   : > { %v616_v63 = vmul.f32 %v2359_v61, %v2303_v60  ;;  %v3169_v0 = vadd.f32 %v2359_v61, %v2303_v60  ;;  %v581_v1 = vpop.f32.mrb[13].mxu1  ;;  %2395 = vmatmul.mubr.msk.f32.gmra.mrb[26].mxu0 %vm660_vm0, %v614_v55 }
 0x141   : > { %v615_v2 = vmul.f32 %v581_v1, %v419_v62  ;;  %v3172_v3 = vadd.f32 %v581_v1, %v419_v62  ;;  %v643_v1 = vsel %vm602_vm1, 0.0, %v3160_v51  ;;  %v646_v51 = vsel %vm602_vm1, 0.0, %v3163_v56 }
 0x142   : > { %v2306_v4 = vpop.f32.mrb[14].mxu0  ;;  %v648_v59 = vsel %vm602_vm1, 0.0, %v3169_v0 }
 0x143   : > { %v2362_v5 = vpop.f32.mrb[14].mxu1  ;;  %2397 = vmatprep.mubr.msk.f32.mxu0 %vm660_vm0, %v615_v2  ;;  %v429_v6 = vpop.f32.mrb[15].mxu0 }
 0x144   : > { %v618_v7 = vmul.f32 %v2362_v5, %v2306_v4  ;;  %v3175_v8 = vadd.f32 %v2362_v5, %v2306_v4  ;;  %v591_v9 = vpop.f32.mrb[15].mxu1  ;;  %2398 = vmatmul.mubr.msk.f32.gmra.mrb[28].mxu0 %vm660_vm0, %v616_v63 }
 0x145   : > { %v617_v10 = vmul.f32 %v591_v9, %v429_v6  ;;  %v3178_v11 = vadd.f32 %v591_v9, %v429_v6 }
 0x147   : > { %2400 = vmatprep.mubr.msk.f32.mxu0 %vm660_vm0, %v617_v10 }
 0x148   : > { %2401 = vmatmul.mubr.msk.f32.gmra.mrb[30].mxu0 %vm660_vm0, %v618_v7 }
 0x1ff   : > { %v2381_v21 = vpop.f32.mrb[16].mxu0 }
 0x200   : > { %v781_v22 = vadd.f32 %v2381_v21, %v636_v20  ;;  %v775_v25 = vpop.f32.mrb[17].mxu0 }
 0x201   : > { %v776_v26 = vadd.f32 %v775_v25, %v635_v23 }
 0x202   : > { %v3203_v28 = vadd.f32 %v3194_v18, %v781_v22 }
 0x203   : > { %v3206_v29 = vadd.f32 %v3194_v18, %v776_v26  ;;  %v2384_v31 = vpop.f32.mrb[18].mxu0 }
 0x204   : > { %v791_v16 = vadd.f32 %v2384_v31, %v638_v30  ;;  %v785_v34 = vpop.f32.mrb[19].mxu0  ;;  %v877_v19 = vsel %vm660_vm0, %v3203_v28, 0.0  ;;  %v923_v38 = vsel %vm602_vm1, %v3203_v28, 0.0  ;;  %v647_v30 = vsel %vm602_vm1, 0.0, %v3172_v3 }
 0x205   : > { %v786_v36 = vadd.f32 %v785_v34, %v637_v33  ;;  %878 = vadd.xlane.f32.xlu1 %v877_v19  ;;  %v874_v37 = vsel %vm660_vm0, %v3206_v29, 0.0  ;;  %v922_v27 = vsel %vm602_vm1, %v3206_v29, 0.0  ;;  %v941_v46 = vsel %vm660_vm0, %v923_v38, 0.0 }
 0x206   : > { %v3222_v24 = vadd.f32 %v3194_v18, %v791_v16  ;;  %875 = vadd.xlane.f32.xlu0 %v874_v37  ;;  %v938_v50 = vsel %vm660_vm0, %v922_v27, 0.0  ;;  %v650_v3 = vsel %vm602_vm1, 0.0, %v3175_v8  ;;  %v649_v38 = vsel %vm602_vm1, 0.0, %v3178_v11 }
 0x207   : > { %v2387_v41 = vpop.f32.mrb[20].mxu0  ;;  %v3235_v47 = vadd.f32 %v3194_v18, %v786_v36 }
 0x208   : > { %v801_v42 = vadd.f32 %v2387_v41, %v640_v39  ;;  %v795_v45 = vpop.f32.mrb[21].mxu0  ;;  %v925_v32 = vsel %vm602_vm1, %v3222_v24, 0.0  ;;  %v883_v61 = vsel %vm660_vm0, %v3222_v24, 0.0 }
 0x209   : > { %v796_v49 = vadd.f32 %v795_v45, %v639_v44  ;;  %942 = vadd.xlane.f32.xlu1 %v941_v46  ;;  %v947_v57 = vsel %vm660_vm0, %v925_v32, 0.0  ;;  %v924_v40 = vsel %vm602_vm1, %v3235_v47, 0.0  ;;  %v880_v7 = vsel %vm660_vm0, %v3235_v47, 0.0 }
 0x20a   : > { %939 = vadd.xlane.f32.xlu0 %v938_v50  ;;  %v3249_v58 = vadd.f32 %v3194_v18, %v801_v42  ;;  %v944_v4 = vsel %vm660_vm0, %v924_v40, 0.0 }
 0x20b   : > { %v2390_v35 = vpop.f32.mrb[22].mxu0  ;;  %v3264_v5 = vadd.f32 %v3194_v18, %v796_v49 }
 0x20c   : > { %v811_v53 = vadd.f32 %v2390_v35, %v642_v52  ;;  %v805_v55 = vpop.f32.mrb[23].mxu0  ;;  %v927_v48 = vsel %vm602_vm1, %v3249_v58, 0.0  ;;  %v889_v23 = vsel %vm660_vm0, %v3249_v58, 0.0 }
 0x20d   : > { %v806_v60 = vadd.f32 %v805_v55, %v641_v54  ;;  %948 = vadd.xlane.f32.xlu1 %v947_v57  ;;  %v953_v20 = vsel %vm660_vm0, %v927_v48, 0.0  ;;  %v926_v56 = vsel %vm602_vm1, %v3264_v5, 0.0  ;;  %v886_v19 = vsel %vm660_vm0, %v3264_v5, 0.0 }
 0x20e   : > { %884 = vadd.xlane.f32.xlu0 %v883_v61  ;;  %v3279_v21 = vadd.f32 %v3194_v18, %v811_v53  ;;  %v950_v16 = vsel %vm660_vm0, %v926_v56, 0.0 }
 0x20f   : > { %v2393_v62 = vpop.f32.mrb[24].mxu0  ;;  %v3294_v33 = vadd.f32 %v3194_v18, %v806_v60 }
 0x210   : > { %v821_v63 = vadd.f32 %v2393_v62, %v644_v43  ;;  %v815_v2 = vpop.f32.mrb[25].mxu0  ;;  %v929_v0 = vsel %vm602_vm1, %v3279_v21, 0.0  ;;  %v895_v44 = vsel %vm660_vm0, %v3279_v21, 0.0 }
 0x211   : > { %v816_v6 = vadd.f32 %v815_v2, %v643_v1  ;;  %945 = vadd.xlane.f32.xlu1 %v944_v4  ;;  %v959_v39 = vsel %vm660_vm0, %v929_v0, 0.0  ;;  %v928_v8 = vsel %vm602_vm1, %v3294_v33, 0.0  ;;  %v892_v46 = vsel %vm660_vm0, %v3294_v33, 0.0 }
 0x212   : > { %881 = vadd.xlane.f32.xlu0 %v880_v7  ;;  %v3309_v41 = vadd.f32 %v3194_v18, %v821_v63  ;;  %v956_v45 = vsel %vm660_vm0, %v928_v8, 0.0 }
 0x213   : > { %v2396_v9 = vpop.f32.mrb[26].mxu0  ;;  %v3318_v11 = vadd.f32 %v3194_v18, %v816_v6 }
 0x214   : > { %v831_v10 = vadd.f32 %v2396_v9, %v646_v51  ;;  %v825_v15 = vpop.f32.mrb[27].mxu0  ;;  %v931_v49 = vsel %vm602_vm1, %v3309_v41, 0.0  ;;  %v901_v52 = vsel %vm660_vm0, %v3309_v41, 0.0 }
 0x215   : > { %v826_v22 = vadd.f32 %v825_v15, %v645_v12  ;;  %954 = vadd.xlane.f32.xlu1 %v953_v20  ;;  %v965_v50 = vsel %vm660_vm0, %v931_v49, 0.0  ;;  %v930_v35 = vsel %vm602_vm1, %v3318_v11, 0.0  ;;  %v898_v55 = vsel %vm660_vm0, %v3318_v11, 0.0 }
 0x216   : > { %890 = vadd.xlane.f32.xlu0 %v889_v23  ;;  %v3327_v32 = vadd.f32 %v3194_v18, %v831_v10  ;;  %v962_v53 = vsel %vm660_vm0, %v930_v35, 0.0 }
 0x217   : > { %v2399_v25 = vpop.f32.mrb[28].mxu0  ;;  %v3336_v54 = vadd.f32 %v3194_v18, %v826_v22 }
 0x218   : > { %v841_v26 = vadd.f32 %v2399_v25, %v648_v59  ;;  %v835_v31 = vpop.f32.mrb[29].mxu0  ;;  %v933_v57 = vsel %vm602_vm1, %v3327_v32, 0.0  ;;  %v907_v40 = vsel %vm660_vm0, %v3327_v32, 0.0 }
 0x219   : > { %v836_v34 = vadd.f32 %v835_v31, %v647_v30  ;;  %951 = vadd.xlane.f32.xlu1 %v950_v16  ;;  %v971_v60 = vsel %vm660_vm0, %v933_v57, 0.0  ;;  %v932_v43 = vsel %vm602_vm1, %v3336_v54, 0.0  ;;  %v904_v1 = vsel %vm660_vm0, %v3336_v54, 0.0 }
 0x21a   : > { %887 = vadd.xlane.f32.xlu0 %v886_v19  ;;  %v3345_v61 = vadd.f32 %v3194_v18, %v841_v26  ;;  %v968_v62 = vsel %vm660_vm0, %v932_v43, 0.0 }
 0x21b   : > { %v2402_v36 = vpop.f32.mrb[30].mxu0  ;;  %v3354_v63 = vadd.f32 %v3194_v18, %v836_v34 }
 0x21c   : > { %v851_v37 = vadd.f32 %v2402_v36, %v650_v3  ;;  %v845_v27 = vpop.f32.mrb[31].mxu0  ;;  %v935_v2 = vsel %vm602_vm1, %v3345_v61, 0.0  ;;  %v913_v7 = vsel %vm660_vm0, %v3345_v61, 0.0 }
 0x21d   : > { %v846_v42 = vadd.f32 %v845_v27, %v649_v38  ;;  %960 = vadd.xlane.f32.xlu1 %v959_v39  ;;  %v977_v4 = vsel %vm660_vm0, %v935_v2, 0.0  ;;  %v934_v48 = vsel %vm602_vm1, %v3354_v63, 0.0  ;;  %v910_v10 = vsel %vm660_vm0, %v3354_v63, 0.0 }
 0x21e   : > { %896 = vadd.xlane.f32.xlu0 %v895_v44  ;;  %v974_v51 = vsel %vm660_vm0, %v934_v48, 0.0  ;;  %v3372_v9 = vadd.f32 %v3194_v18, %v851_v37 }
 0x21f   : > { %v3363_v6 = vadd.f32 %v3194_v18, %v846_v42 }
 0x220   : > { %v937_v18 = vsel %vm602_vm1, %v3372_v9, 0.0  ;;  %v919_v23 = vsel %vm660_vm0, %v3372_v9, 0.0 }
 0x221   : > { %957 = vadd.xlane.f32.xlu1 %v956_v45  ;;  %v936_v12 = vsel %vm602_vm1, %v3363_v6, 0.0  ;;  %v916_v20 = vsel %vm660_vm0, %v3363_v6, 0.0  ;;  %v983_v22 = vsel %vm660_vm0, %v937_v18, 0.0 }
 0x222   : > { %893 = vadd.xlane.f32.xlu0 %v892_v46  ;;  %v980_v15 = vsel %vm660_vm0, %v936_v12, 0.0 }
 0x225   : > { %966 = vadd.xlane.f32.xlu1 %v965_v50 }
 0x226   : > { %902 = vadd.xlane.f32.xlu0 %v901_v52 }
 0x229   : > { %963 = vadd.xlane.f32.xlu1 %v962_v53 }
 0x22a   : > { %899 = vadd.xlane.f32.xlu0 %v898_v55 }
 0x22d   : > { %972 = vadd.xlane.f32.xlu1 %v971_v60 }
 0x22e   : > { %908 = vadd.xlane.f32.xlu0 %v907_v40 }
 0x231   : > { %969 = vadd.xlane.f32.xlu1 %v968_v62 }
 0x232   : > { %905 = vadd.xlane.f32.xlu0 %v904_v1 }
 0x235   : > { %978 = vadd.xlane.f32.xlu1 %v977_v4 }
 0x236   : > { %914 = vadd.xlane.f32.xlu0 %v913_v7 }
 0x239   : > { %975 = vadd.xlane.f32.xlu1 %v974_v51 }
 0x23a   : > { %911 = vadd.xlane.f32.xlu0 %v910_v10 }
 0x23d   : > { %981 = vadd.xlane.f32.xlu1 %v980_v15 }
 0x23e   : > { %917 = vadd.xlane.f32.xlu0 %v916_v20 }
 0x241   : > { %984 = vadd.xlane.f32.xlu1 %v983_v22 }
 0x242   : > { %920 = vadd.xlane.f32.xlu0 %v919_v23 }
 0x292   : > { %v879_v56 = vpop.xlane.xlu1 %878 }
 0x293   : > { %v876_v59 = vpop.xlane.xlu0 %875 }
 0x296   : > { %v943_v25 = vpop.xlane.xlu1 %942 }
 0x297   : > { %v1003_v26 = vsub.f32 %v879_v56, %v943_v25  ;;  %v940_v30 = vpop.xlane.xlu0 %939  ;;  %v987_v16 = vmul.f32 0.03125, %v943_v25 }
 0x298   : > { %v1002_v31 = vsub.f32 %v876_v59, %v940_v30  ;;  %v986_v19 = vmul.f32 0.03125, %v940_v30 }
 0x299   : > { %v1019_v34 = vmul.f32 0.03125, %v1003_v26 }
 0x29a   : > { %v1018_v0 = vmul.f32 0.03125, %v1002_v31  ;;  %v949_v3 = vpop.xlane.xlu1 %948 }
 0x29b   : > { %v885_v36 = vpop.xlane.xlu0 %884  ;;  %v1035_v37 = vsel %vm602_vm1, %v987_v16, %v1019_v34  ;;  %v989_v44 = vmul.f32 0.03125, %v949_v3 }
 0x29c   : > { %v1005_v38 = vsub.f32 %v885_v36, %v949_v3  ;;  %v3391_v27 = vsub.f32 %v3203_v28, %v1035_v37  ;;  %v1034_v39 = vsel %vm602_vm1, %v986_v19, %v1018_v0 }
 0x29d   : > { %v3396_v42 = vsub.f32 %v3206_v29, %v1034_v39 }
 0x29e   : > { %v1021_v8 = vmul.f32 0.03125, %v1005_v38  ;;  %v946_v45 = vpop.xlane.xlu1 %945  ;;  %v1067_v46 = vmul.f32 %v3391_v27, %v3391_v27 }
 0x29f   : > { %v882_v49 = vpop.xlane.xlu0 %881  ;;  %v1066_v50 = vmul.f32 %v3396_v42, %v3396_v42  ;;  %v988_v57 = vmul.f32 0.03125, %v946_v45 }
 0x2a0   : > { %v1004_v52 = vsub.f32 %v882_v49, %v946_v45  ;;  %v1085_v28 = vsel %vm660_vm0, %v1067_v46, 0.0  ;;  %v1131_v35 = vsel %vm602_vm1, %v1067_v46, 0.0  ;;  %v1037_v29 = vsel %vm602_vm1, %v989_v44, %v1021_v8 }
 0x2a1   : > { %1086 = vadd.xlane.f32.xlu0 %v1085_v28  ;;  %v1149_v53 = vsel %vm660_vm0, %v1131_v35, 0.0  ;;  %v3409_v55 = vsub.f32 %v3222_v24, %v1037_v29  ;;  %v1130_v43 = vsel %vm602_vm1, %v1066_v50, 0.0  ;;  %v1082_v4 = vsel %vm660_vm0, %v1066_v50, 0.0 }
 0x2a2   : > { %v1020_v60 = vmul.f32 0.03125, %v1004_v52  ;;  %v955_v40 = vpop.xlane.xlu1 %954  ;;  %1150 = vadd.xlane.f32.xlu1 %v1149_v53  ;;  %v1146_v24 = vsel %vm660_vm0, %v1130_v43, 0.0 }
 0x2a3   : > { %v891_v62 = vpop.xlane.xlu0 %890  ;;  %v1069_v1 = vmul.f32 %v3409_v55, %v3409_v55  ;;  %v991_v51 = vmul.f32 0.03125, %v955_v40 }
 0x2a4   : > { %v1007_v2 = vsub.f32 %v891_v62, %v955_v40  ;;  %v1036_v7 = vsel %vm602_vm1, %v988_v57, %v1020_v60 }
 0x2a5   : > { %1083 = vadd.xlane.f32.xlu0 %v1082_v4  ;;  %v3420_v48 = vsub.f32 %v3235_v47, %v1036_v7  ;;  %v1133_v15 = vsel %vm602_vm1, %v1069_v1, 0.0  ;;  %v1091_v23 = vsel %vm660_vm0, %v1069_v1, 0.0 }
 0x2a6   : > { %v1023_v10 = vmul.f32 0.03125, %v1007_v2  ;;  %v952_v12 = vpop.xlane.xlu1 %951  ;;  %1147 = vadd.xlane.f32.xlu1 %v1146_v24  ;;  %v1155_v47 = vsel %vm660_vm0, %v1133_v15, 0.0 }
 0x2a7   : > { %v888_v20 = vpop.xlane.xlu0 %887  ;;  %v1068_v18 = vmul.f32 %v3420_v48, %v3420_v48  ;;  %v990_v25 = vmul.f32 0.03125, %v952_v12 }
 0x2a8   : > { %v1006_v22 = vsub.f32 %v888_v20, %v952_v12  ;;  %v1039_v56 = vsel %vm602_vm1, %v991_v51, %v1023_v10 }
 0x2a9   : > { %1092 = vadd.xlane.f32.xlu0 %v1091_v23  ;;  %v3431_v59 = vsub.f32 %v3249_v58, %v1039_v56  ;;  %v1132_v31 = vsel %vm602_vm1, %v1068_v18, 0.0  ;;  %v1088_v0 = vsel %vm660_vm0, %v1068_v18, 0.0 }
 0x2aa   : > { %v1022_v26 = vmul.f32 0.03125, %v1006_v22  ;;  %v961_v30 = vpop.xlane.xlu1 %960  ;;  %1156 = vadd.xlane.f32.xlu1 %v1155_v47  ;;  %v1152_v58 = vsel %vm660_vm0, %v1132_v31, 0.0 }
 0x2ab   : > { %v897_v16 = vpop.xlane.xlu0 %896  ;;  %v1071_v34 = vmul.f32 %v3431_v59, %v3431_v59  ;;  %v993_v37 = vmul.f32 0.03125, %v961_v30 }
 0x2ac   : > { %v1009_v19 = vsub.f32 %v897_v16, %v961_v30  ;;  %v1038_v3 = vsel %vm602_vm1, %v990_v25, %v1022_v26 }
 0x2ad   : > { %1089 = vadd.xlane.f32.xlu0 %v1088_v0  ;;  %v3442_v36 = vsub.f32 %v3264_v5, %v1038_v3  ;;  %v1135_v44 = vsel %vm602_vm1, %v1071_v34, 0.0  ;;  %v1097_v49 = vsel %vm660_vm0, %v1071_v34, 0.0  ;;  %v1394_v34 = vld [vmem:[#allocation2] sm:$0xff] }
 0x2ae   : > { %v1025_v38 = vmul.f32 0.03125, %v1009_v19  ;;  %v958_v39 = vpop.xlane.xlu1 %957  ;;  %1153 = vadd.xlane.f32.xlu1 %v1152_v58  ;;  %v1161_v5 = vsel %vm660_vm0, %v1135_v44, 0.0 }
 0x2af   : > { %v894_v8 = vpop.xlane.xlu0 %893  ;;  %v1070_v45 = vmul.f32 %v3442_v36, %v3442_v36  ;;  %v992_v28 = vmul.f32 0.03125, %v958_v39 }
 0x2b0   : > { %v1008_v46 = vsub.f32 %v894_v8, %v958_v39  ;;  %v1041_v50 = vsel %vm602_vm1, %v993_v37, %v1025_v38 }
 0x2b1   : > { %1098 = vadd.xlane.f32.xlu0 %v1097_v49  ;;  %v3453_v52 = vsub.f32 %v3279_v21, %v1041_v50  ;;  %v1134_v53 = vsel %vm602_vm1, %v1070_v45, 0.0  ;;  %v1094_v43 = vsel %vm660_vm0, %v1070_v45, 0.0  ;;  %v1396_v49 = vld [vmem:[#allocation2 + $0x10] sm:$0xff]  ;;  %v1397_v50 = vld [vmem:[#allocation2 + $0x18] sm:$0xff] }
 0x2b2   : > { %v1024_v35 = vmul.f32 0.03125, %v1008_v46  ;;  %v967_v29 = vpop.xlane.xlu1 %966  ;;  %1162 = vadd.xlane.f32.xlu1 %v1161_v5  ;;  %v1158_v21 = vsel %vm660_vm0, %v1134_v53, 0.0 }
 0x2b3   : > { %v903_v57 = vpop.xlane.xlu0 %902  ;;  %v1073_v60 = vmul.f32 %v3453_v52, %v3453_v52  ;;  %v995_v2 = vmul.f32 0.03125, %v967_v29 }
 0x2b4   : > { %v1011_v40 = vsub.f32 %v903_v57, %v967_v29  ;;  %v1040_v62 = vsel %vm602_vm1, %v992_v28, %v1024_v35  ;;  %v2527_v35 = vpack.c.bf16 %v1397_v50, %v1396_v49 }
 0x2b5   : > { %1095 = vadd.xlane.f32.xlu0 %v1094_v43  ;;  %v3464_v1 = vsub.f32 %v3294_v33, %v1040_v62  ;;  %v1137_v24 = vsel %vm602_vm1, %v1073_v60, 0.0  ;;  %v1103_v15 = vsel %vm660_vm0, %v1073_v60, 0.0 }
 0x2b6   : > { %v1027_v4 = vmul.f32 0.03125, %v1011_v40  ;;  %v964_v7 = vpop.xlane.xlu1 %963  ;;  %1159 = vadd.xlane.f32.xlu1 %v1158_v21  ;;  %v1167_v33 = vsel %vm660_vm0, %v1137_v24, 0.0 }
 0x2b7   : > { %v900_v51 = vpop.xlane.xlu0 %899  ;;  %v1072_v10 = vmul.f32 %v3464_v1, %v3464_v1  ;;  %v994_v22 = vmul.f32 0.03125, %v964_v7 }
 0x2b8   : > { %v1010_v12 = vsub.f32 %v900_v51, %v964_v7  ;;  %v1043_v20 = vsel %vm602_vm1, %v995_v2, %v1027_v4  ;;  %v1398_v2 = vld [vmem:[#allocation2 + $0x20] sm:$0xff]  ;;  %v1399_v4 = vld [vmem:[#allocation2 + $0x28] sm:$0xff] }
 0x2b9   : > { %1104 = vadd.xlane.f32.xlu0 %v1103_v15  ;;  %v3475_v18 = vsub.f32 %v3309_v41, %v1043_v20  ;;  %v1136_v47 = vsel %vm602_vm1, %v1072_v10, 0.0  ;;  %v1100_v31 = vsel %vm660_vm0, %v1072_v10, 0.0  ;;  %v1395_v41 = vld [vmem:[#allocation2 + $0x8] sm:$0xff]  ;;  %v2531_v51 = vpack.c.bf16 %v1399_v4, %v1398_v2 }
 0x2ba   : > { %v1026_v23 = vmul.f32 0.03125, %v1010_v12  ;;  %v973_v56 = vpop.xlane.xlu1 %972  ;;  %1168 = vadd.xlane.f32.xlu1 %v1167_v33  ;;  %v1164_v19 = vsel %vm660_vm0, %v1136_v47, 0.0  ;;  %v2523_v3 = vpack.c.bf16 %v1395_v41, %v1394_v34  ;;  %v1400_v47 = vld [vmem:[#allocation2 + $0x30] sm:$0xff] }
 0x2bb   : > { %v909_v25 = vpop.xlane.xlu0 %908  ;;  %v1075_v26 = vmul.f32 %v3475_v18, %v3475_v18  ;;  %v997_v58 = vmul.f32 0.03125, %v973_v56 }
 0x2bc   : > { %v1013_v30 = vsub.f32 %v909_v25, %v973_v56  ;;  %v1042_v16 = vsel %vm602_vm1, %v994_v22, %v1026_v23  ;;  %2524 = vmatprep.subr.bf16.mxu1 %v2523_v3  ;;  %v1401_v25 = vld [vmem:[#allocation2 + $0x38] sm:$0xff] }
 0x2bd   : > { %1101 = vadd.xlane.f32.xlu0 %v1100_v31  ;;  %v3486_v0 = vsub.f32 %v3318_v11, %v1042_v16  ;;  %v1139_v39 = vsel %vm602_vm1, %v1075_v26, 0.0  ;;  %v1109_v46 = vsel %vm660_vm0, %v1075_v26, 0.0  ;;  %2526 = vmatpush3.bf16.msra.mxu1 %v2523_v3  ;;  %v2535_v31 = vpack.c.bf16 %v1401_v25, %v1400_v47 }
 0x2be   : > { %v1029_v37 = vmul.f32 0.03125, %v1013_v30  ;;  %v970_v38 = vpop.xlane.xlu1 %969  ;;  %1165 = vadd.xlane.f32.xlu1 %v1164_v19  ;;  %v1173_v5 = vsel %vm660_vm0, %v1139_v39, 0.0  ;;  %2528 = vmatprep.subr.bf16.mxu1 %v2527_v35 }
 0x2bf   : > { %v906_v44 = vpop.xlane.xlu0 %905  ;;  %v1074_v8 = vmul.f32 %v3486_v0, %v3486_v0  ;;  %v996_v29 = vmul.f32 0.03125, %v970_v38 }
 0x2c0   : > { %v1012_v45 = vsub.f32 %v906_v44, %v970_v38  ;;  %v1045_v11 = vsel %vm602_vm1, %v997_v58, %v1029_v37 }
 0x2c1   : > { %1110 = vadd.xlane.f32.xlu0 %v1109_v46  ;;  %v3497_v28 = vsub.f32 %v3327_v32, %v1045_v11  ;;  %v1138_v60 = vsel %vm602_vm1, %v1074_v8, 0.0  ;;  %v1106_v21 = vsel %vm660_vm0, %v1074_v8, 0.0  ;;  %2530 = vmatpush3.bf16.msra.mxu1 %v2527_v35 }
 0x2c2   : > { %v1028_v53 = vmul.f32 0.03125, %v1012_v45  ;;  %v979_v57 = vpop.xlane.xlu1 %978  ;;  %1174 = vadd.xlane.f32.xlu1 %v1173_v5  ;;  %v1170_v7 = vsel %vm660_vm0, %v1138_v60, 0.0  ;;  %2532 = vmatprep.subr.bf16.mxu1 %v2531_v51 }
 0x2c3   : > { %v915_v40 = vpop.xlane.xlu0 %914  ;;  %v1077_v43 = vmul.f32 %v3497_v28, %v3497_v28  ;;  %v999_v10 = vmul.f32 0.03125, %v979_v57 }
 0x2c4   : > { %v1015_v62 = vsub.f32 %v915_v40, %v979_v57  ;;  %v1044_v32 = vsel %vm602_vm1, %v996_v29, %v1028_v53 }
 0x2c5   : > { %1107 = vadd.xlane.f32.xlu0 %v1106_v21  ;;  %v3508_v24 = vsub.f32 %v3336_v54, %v1044_v32  ;;  %v1141_v20 = vsel %vm602_vm1, %v1077_v43, 0.0  ;;  %v1115_v56 = vsel %vm660_vm0, %v1077_v43, 0.0  ;;  %2534 = vmatpush3.bf16.msra.mxu1 %v2531_v51 }
 0x2c6   : > { %v1031_v12 = vmul.f32 0.03125, %v1015_v62  ;;  %v976_v15 = vpop.xlane.xlu1 %975  ;;  %1171 = vadd.xlane.f32.xlu1 %v1170_v7  ;;  %v1179_v26 = vsel %vm660_vm0, %v1141_v20, 0.0  ;;  %2536 = vmatprep.subr.bf16.mxu1 %v2535_v31 }
 0x2c7   : > { %v912_v33 = vpop.xlane.xlu0 %911  ;;  %v1076_v22 = vmul.f32 %v3508_v24, %v3508_v24  ;;  %v998_v16 = vmul.f32 0.03125, %v976_v15 }
 0x2c8   : > { %v1014_v23 = vsub.f32 %v912_v33, %v976_v15  ;;  %v1047_v54 = vsel %vm602_vm1, %v999_v10, %v1031_v12 }
 0x2c9   : > { %1116 = vadd.xlane.f32.xlu0 %v1115_v56  ;;  %v3519_v30 = vsub.f32 %v3345_v61, %v1047_v54  ;;  %v1140_v19 = vsel %vm602_vm1, %v1076_v22, 0.0  ;;  %v1112_v38 = vsel %vm660_vm0, %v1076_v22, 0.0  ;;  %2538 = vmatpush3.bf16.msra.mxu1 %v2535_v31 }
 0x2ca   : > { %v1030_v34 = vmul.f32 0.03125, %v1014_v23  ;;  %1180 = vadd.xlane.f32.xlu1 %v1179_v26  ;;  %v982_v41 = vpop.xlane.xlu1 %981  ;;  %v1176_v39 = vsel %vm660_vm0, %v1140_v19, 0.0 }
 0x2cb   : > { %v918_v3 = vpop.xlane.xlu0 %917  ;;  %v1079_v58 = vmul.f32 %v3519_v30, %v3519_v30  ;;  %v1000_v8 = vmul.f32 0.03125, %v982_v41 }
 0x2cc   : > { %v1016_v37 = vsub.f32 %v918_v3, %v982_v41  ;;  %v1046_v61 = vsel %vm602_vm1, %v998_v16, %v1030_v34 }
 0x2cd   : > { %1113 = vadd.xlane.f32.xlu0 %v1112_v38  ;;  %v3530_v44 = vsub.f32 %v3354_v63, %v1046_v61  ;;  %v1143_v11 = vsel %vm602_vm1, %v1079_v58, 0.0  ;;  %v1121_v35 = vsel %vm660_vm0, %v1079_v58, 0.0 }
 0x2ce   : > { %v1032_v45 = vmul.f32 0.03125, %v1016_v37  ;;  %1177 = vadd.xlane.f32.xlu1 %v1176_v39  ;;  %v985_v46 = vpop.xlane.xlu1 %984  ;;  %v1185_v63 = vsel %vm660_vm0, %v1143_v11, 0.0 }
 0x2cf   : > { %v921_v49 = vpop.xlane.xlu0 %920  ;;  %v1078_v50 = vmul.f32 %v3530_v44, %v3530_v44  ;;  %v1001_v57 = vmul.f32 0.03125, %v985_v46 }
 0x2d0   : > { %v1017_v5 = vsub.f32 %v921_v49, %v985_v46  ;;  %v1048_v29 = vsel %vm602_vm1, %v1000_v8, %v1032_v45  ;;  %v1340_v49 = vsub.s32 1, %v3182_v13 }
 0x2d1   : > { %1122 = vadd.xlane.f32.xlu0 %v1121_v35  ;;  %v3541_v53 = vsub.f32 %v3363_v6, %v1048_v29  ;;  %v1142_v40 = vsel %vm602_vm1, %v1078_v50, 0.0  ;;  %v1118_v62 = vsel %vm660_vm0, %v1078_v50, 0.0 }
 0x2d2   : > { %v1033_v60 = vmul.f32 0.03125, %v1017_v5  ;;  %1186 = vadd.xlane.f32.xlu1 %v1185_v63  ;;  %v1182_v32 = vsel %vm660_vm0, %v1142_v40, 0.0 }
 0x2d3   : > { %v1080_v43 = vmul.f32 %v3541_v53, %v3541_v53 }
 0x2d4   : > { %v1049_v21 = vsel %vm602_vm1, %v1001_v57, %v1033_v60 }
 0x2d5   : > { %1119 = vadd.xlane.f32.xlu0 %v1118_v62  ;;  %v3552_v6 = vsub.f32 %v3372_v9, %v1049_v21  ;;  %v1144_v2 = vsel %vm602_vm1, %v1080_v43, 0.0  ;;  %v1124_v7 = vsel %vm660_vm0, %v1080_v43, 0.0  ;;  %v1360_v62 = vsub.s32 2, %v3182_v13 }
 0x2d6   : > { %1183 = vadd.xlane.f32.xlu1 %v1182_v32  ;;  %v1188_v51 = vsel %vm660_vm0, %v1144_v2, 0.0  ;;  %v3567_v21 = vrot.slane %v3190_v17, %v1340_v49 }
 0x2d7   : > { %v1081_v4 = vmul.f32 %v3552_v6, %v3552_v6 }
 0x2d9   : > { %1125 = vadd.xlane.f32.xlu0 %v1124_v7  ;;  %v1145_v10 = vsel %vm602_vm1, %v1081_v4, 0.0  ;;  %v1127_v12 = vsel %vm660_vm0, %v1081_v4, 0.0 }
 0x2da   : > { %1189 = vadd.xlane.f32.xlu1 %v1188_v51  ;;  %v1191_v9 = vsel %vm660_vm0, %v1145_v10, 0.0 }
 0x2dd   : > { %1128 = vadd.xlane.f32.xlu0 %v1127_v12 }
 0x2de   : > { %1192 = vadd.xlane.f32.xlu1 %v1191_v9 }
 0x32e   : > { %v1087_v15 = vpop.xlane.xlu0 %1086 }
 0x32f   : > { %v1151_v20 = vpop.xlane.xlu1 %1150 }
 0x330   : > { %v1195_v33 = vmul.f32 0.03125, %v1151_v20  ;;  %v1243_v22 = vsub.f32 %v1087_v15, %v1151_v20 }
 0x332   : > { %v1211_v23 = vadd.f32 1e-05, %v1195_v33  ;;  %v1259_v56 = vmul.f32 0.03125, %v1243_v22  ;;  %v1084_v54 = vpop.xlane.xlu0 %1083  ;;  %v3573_v22 = vrot.slane %v3190_v17, %v1360_v62 }
 0x333   : > { %v1148_v47 = vpop.xlane.xlu1 %1147 }
 0x334   : > { %v1275_v25 = vadd.f32 1e-05, %v1259_v56  ;;  %v1194_v26 = vmul.f32 0.03125, %v1148_v47  ;;  %v1242_v31 = vsub.f32 %v1084_v54, %v1148_v47  ;;  %2641 = vrsqrt.f32 %v1211_v23 }
 0x336   : > { %2643 = vrsqrt.f32 %v1275_v25  ;;  %v1210_v16 = vadd.f32 1e-05, %v1194_v26  ;;  %v1258_v34 = vmul.f32 0.03125, %v1242_v31  ;;  %v1093_v41 = vpop.xlane.xlu0 %1092 }
 0x337   : > { %v1157_v19 = vpop.xlane.xlu1 %1156 }
 0x338   : > { %v1274_v3 = vadd.f32 1e-05, %v1258_v34  ;;  %v1197_v58 = vmul.f32 0.03125, %v1157_v19  ;;  %v1245_v37 = vsub.f32 %v1093_v41, %v1157_v19  ;;  %2645 = vrsqrt.f32 %v1210_v16 }
 0x33a   : > { %2647 = vrsqrt.f32 %v1274_v3  ;;  %v1213_v38 = vadd.f32 1e-05, %v1197_v58  ;;  %v1261_v61 = vmul.f32 0.03125, %v1245_v37  ;;  %v1090_v39 = vpop.xlane.xlu0 %1089 }
 0x33b   : > { %v1154_v8 = vpop.xlane.xlu1 %1153 }
 0x33c   : > { %v1277_v45 = vadd.f32 1e-05, %v1261_v61  ;;  %v1196_v46 = vmul.f32 0.03125, %v1154_v8  ;;  %v1244_v11 = vsub.f32 %v1090_v39, %v1154_v8  ;;  %2649 = vrsqrt.f32 %v1213_v38 }
 0x33e   : > { %2651 = vrsqrt.f32 %v1277_v45  ;;  %v1212_v50 = vadd.f32 1e-05, %v1196_v46  ;;  %v1260_v5 = vmul.f32 0.03125, %v1244_v11  ;;  %v1099_v35 = vpop.xlane.xlu0 %1098  ;;  %v2642_v29 = vpop.eup %2641 }
 0x33f   : > { %v1163_v63 = vpop.xlane.xlu1 %1162 }
 0x340   : > { %v2644_v57 = vpop.eup %2643  ;;  %v1276_v60 = vadd.f32 1e-05, %v1260_v5  ;;  %v1199_v40 = vmul.f32 0.03125, %v1163_v63  ;;  %v1247_v43 = vsub.f32 %v1099_v35, %v1163_v63  ;;  %2653 = vrsqrt.f32 %v1212_v50 }
 0x341   : > { %v1307_v32 = vsel %vm602_vm1, %v2642_v29, %v2644_v57 }
 0x342   : > { %2655 = vrsqrt.f32 %v1276_v60  ;;  %v1215_v2 = vadd.f32 1e-05, %v1199_v40  ;;  %v1263_v4 = vmul.f32 0.03125, %v1247_v43  ;;  %v1096_v7 = vpop.xlane.xlu0 %1095  ;;  %v1323_v51 = vmul.f32 %v1307_v32, %v3391_v27  ;;  %v2646_v10 = vpop.eup %2645 }
 0x343   : > { %v1160_v12 = vpop.xlane.xlu1 %1159 }
 0x344   : > { %v2648_v9 = vpop.eup %2647  ;;  %v1279_v15 = vadd.f32 1e-05, %v1263_v4  ;;  %v1198_v20 = vmul.f32 0.03125, %v1160_v12  ;;  %v1246_v33 = vsub.f32 %v1096_v7, %v1160_v12  ;;  %2657 = vrsqrt.f32 %v1215_v2 }
 0x345   : > { %v1306_v23 = vsel %vm602_vm1, %v2646_v10, %v2648_v9  ;;  %v1343_v56 = vmul.f32 %v3567_v21, %v1323_v51 }
 0x346   : > { %2659 = vrsqrt.f32 %v1279_v15  ;;  %v1214_v54 = vadd.f32 1e-05, %v1198_v20  ;;  %v1262_v47 = vmul.f32 0.03125, %v1246_v33  ;;  %v1105_v25 = vpop.xlane.xlu0 %1104  ;;  %v1322_v27 = vmul.f32 %v1306_v23, %v3396_v42  ;;  %v2650_v26 = vpop.eup %2649 }
 0x347   : > { %v1169_v31 = vpop.xlane.xlu1 %1168  ;;  %v1363_v17 = vadd.f32 %v3573_v22, %v1343_v56 }
 0x348   : > { %v2652_v16 = vpop.eup %2651  ;;  %v1278_v34 = vadd.f32 1e-05, %v1262_v47  ;;  %v1201_v41 = vmul.f32 0.03125, %v1169_v31  ;;  %v1249_v19 = vsub.f32 %v1105_v25, %v1169_v31  ;;  %2661 = vrsqrt.f32 %v1214_v54 }
 0x349   : > { %v1342_v3 = vmul.f32 %v3567_v21, %v1322_v27  ;;  %v1309_v58 = vsel %vm602_vm1, %v2650_v26, %v2652_v16  ;;  %v1379_v5 = vmax.f32 %v1363_v17, 0.0 }
 0x34a   : > { %2663 = vrsqrt.f32 %v1278_v34  ;;  %v1217_v37 = vadd.f32 1e-05, %v1201_v41  ;;  %v1265_v38 = vmul.f32 0.03125, %v1249_v19  ;;  %v1102_v61 = vpop.xlane.xlu0 %1101  ;;  %v1325_v42 = vmul.f32 %v1309_v58, %v3409_v55  ;;  %v2654_v39 = vpop.eup %2653 }
 0x34b   : > { %v1166_v8 = vpop.xlane.xlu1 %1165  ;;  %v1362_v45 = vadd.f32 %v3573_v22, %v1342_v3 }
 0x34c   : > { %v2656_v46 = vpop.eup %2655  ;;  %v1281_v11 = vadd.f32 1e-05, %v1265_v38  ;;  %v1200_v49 = vmul.f32 0.03125, %v1166_v8  ;;  %v1248_v50 = vsub.f32 %v1102_v61, %v1166_v8  ;;  %2665 = vrsqrt.f32 %v1217_v37 }
 0x34d   : > { %v1378_v35 = vmax.f32 %v1362_v45, 0.0  ;;  %v1308_v29 = vsel %vm602_vm1, %v2654_v39, %v2656_v46  ;;  %v1345_v63 = vmul.f32 %v3567_v21, %v1325_v42 }
 0x34e   : > { %2667 = vrsqrt.f32 %v1281_v11  ;;  %v1216_v57 = vadd.f32 1e-05, %v1200_v49  ;;  %v1264_v60 = vmul.f32 0.03125, %v1248_v50  ;;  %v1111_v55 = vpop.xlane.xlu0 %1110  ;;  %v1324_v40 = vmul.f32 %v1308_v29, %v3420_v48  ;;  %v2658_v43 = vpop.eup %2657 }
 0x34f   : > { %2419 = vmatprep.mubr.msk.f32.mxu1 %vm660_vm0, %v1378_v35  ;;  %v1175_v62 = vpop.xlane.xlu1 %1174  ;;  %v1365_v51 = vadd.f32 %v3573_v22, %v1345_v63 }
 0x350   : > { %v2660_v32 = vpop.eup %2659  ;;  %v1280_v2 = vadd.f32 1e-05, %v1264_v60  ;;  %v1203_v4 = vmul.f32 0.03125, %v1175_v62  ;;  %v1251_v7 = vsub.f32 %v1111_v55, %v1175_v62  ;;  %2420 = vmatmul.mubr.msk.f32.vlgmr.msra.gmra.mrb[16].mxu1 %vm660_vm0, %v1379_v5  ;;  %2669 = vrsqrt.f32 %v1216_v57 }
 0x351   : > { %v1344_v10 = vmul.f32 %v3567_v21, %v1324_v40  ;;  %v1311_v12 = vsel %vm602_vm1, %v2658_v43, %v2660_v32  ;;  %v1381_v26 = vmax.f32 %v1365_v51, 0.0 }
 0x352   : > { %2671 = vrsqrt.f32 %v1280_v2  ;;  %v1219_v48 = vadd.f32 1e-05, %v1203_v4  ;;  %v1267_v9 = vmul.f32 0.03125, %v1251_v7  ;;  %v1108_v15 = vpop.xlane.xlu0 %1107  ;;  %v1327_v20 = vmul.f32 %v1311_v12, %v3431_v59  ;;  %v2662_v33 = vpop.eup %2661 }
 0x353   : > { %v1172_v23 = vpop.xlane.xlu1 %1171  ;;  %v1364_v56 = vadd.f32 %v3573_v22, %v1344_v10 }
 0x354   : > { %v2664_v54 = vpop.eup %2663  ;;  %v1283_v47 = vadd.f32 1e-05, %v1267_v9  ;;  %v1202_v25 = vmul.f32 0.03125, %v1172_v23  ;;  %v1250_v27 = vsub.f32 %v1108_v15, %v1172_v23  ;;  %2673 = vrsqrt.f32 %v1219_v48 }
 0x355   : > { %v1380_v31 = vmax.f32 %v1364_v56, 0.0  ;;  %v1310_v16 = vsel %vm602_vm1, %v2662_v33, %v2664_v54  ;;  %v1347_v34 = vmul.f32 %v3567_v21, %v1327_v20 }
 0x356   : > { %2675 = vrsqrt.f32 %v1283_v47  ;;  %v1218_v41 = vadd.f32 1e-05, %v1202_v25  ;;  %v1266_v19 = vmul.f32 0.03125, %v1250_v27  ;;  %v1117_v59 = vpop.xlane.xlu0 %1116  ;;  %v1326_v17 = vmul.f32 %v1310_v16, %v3442_v36  ;;  %v2666_v3 = vpop.eup %2665 }
 0x357   : > { %2422 = vmatprep.mubr.msk.f32.mxu1 %vm660_vm0, %v1380_v31  ;;  %v1181_v58 = vpop.xlane.xlu1 %1180  ;;  %v1367_v39 = vadd.f32 %v3573_v22, %v1347_v34 }
 0x358   : > { %v2668_v37 = vpop.eup %2667  ;;  %v1282_v38 = vadd.f32 1e-05, %v1266_v19  ;;  %v1205_v61 = vmul.f32 0.03125, %v1181_v58  ;;  %v1253_v42 = vsub.f32 %v1117_v59, %v1181_v58  ;;  %2423 = vmatmul.mubr.msk.f32.gmra.mrb[18].mxu1 %vm660_vm0, %v1381_v26  ;;  %2677 = vrsqrt.f32 %v1218_v41 }
 0x359   : > { %v1346_v8 = vmul.f32 %v3567_v21, %v1326_v17  ;;  %v1313_v45 = vsel %vm602_vm1, %v2666_v3, %v2668_v37  ;;  %v1383_v55 = vmax.f32 %v1367_v39, 0.0 }
 0x35a   : > { %2679 = vrsqrt.f32 %v1282_v38  ;;  %v1221_v36 = vadd.f32 1e-05, %v1205_v61  ;;  %v1269_v46 = vmul.f32 0.03125, %v1253_v42  ;;  %v1114_v11 = vpop.xlane.xlu0 %1113  ;;  %v1329_v49 = vmul.f32 %v1313_v45, %v3453_v52  ;;  %v2670_v50 = vpop.eup %2669 }
 0x35b   : > { %v1178_v5 = vpop.xlane.xlu1 %1177  ;;  %v1366_v35 = vadd.f32 %v3573_v22, %v1346_v8 }
 0x35c   : > { %v2672_v29 = vpop.eup %2671  ;;  %v1285_v63 = vadd.f32 1e-05, %v1269_v46  ;;  %v1204_v57 = vmul.f32 0.03125, %v1178_v5  ;;  %v1252_v60 = vsub.f32 %v1114_v11, %v1178_v5  ;;  %2681 = vrsqrt.f32 %v1221_v36 }
 0x35d   : > { %v1382_v40 = vmax.f32 %v1366_v35, 0.0  ;;  %v1312_v43 = vsel %vm602_vm1, %v2670_v50, %v2672_v29  ;;  %v1349_v62 = vmul.f32 %v3567_v21, %v1329_v49 }
 0x35e   : > { %2683 = vrsqrt.f32 %v1285_v63  ;;  %v1220_v32 = vadd.f32 1e-05, %v1204_v57  ;;  %v1268_v2 = vmul.f32 0.03125, %v1252_v60  ;;  %v1123_v52 = vpop.xlane.xlu0 %1122  ;;  %v1328_v4 = vmul.f32 %v1312_v43, %v3464_v1  ;;  %v2674_v7 = vpop.eup %2673 }
 0x35f   : > { %2425 = vmatprep.mubr.msk.f32.mxu1 %vm660_vm0, %v1382_v40  ;;  %v1187_v51 = vpop.xlane.xlu1 %1186  ;;  %v1369_v15 = vadd.f32 %v3573_v22, %v1349_v62 }
 0x360   : > { %v2676_v10 = vpop.eup %2675  ;;  %v1284_v12 = vadd.f32 1e-05, %v1268_v2  ;;  %v1207_v48 = vmul.f32 0.03125, %v1187_v51  ;;  %v1255_v9 = vsub.f32 %v1123_v52, %v1187_v51  ;;  %2426 = vmatmul.mubr.msk.f32.gmra.mrb[20].mxu1 %vm660_vm0, %v1383_v55  ;;  %2685 = vrsqrt.f32 %v1220_v32 }
 0x361   : > { %v1348_v20 = vmul.f32 %v3567_v21, %v1328_v4  ;;  %v1315_v33 = vsel %vm602_vm1, %v2674_v7, %v2676_v10  ;;  %v1385_v41 = vmax.f32 %v1369_v15, 0.0 }
 0x362   : > { %2687 = vrsqrt.f32 %v1284_v12  ;;  %v1223_v1 = vadd.f32 1e-05, %v1207_v48  ;;  %v1271_v23 = vmul.f32 0.03125, %v1255_v9  ;;  %v1120_v56 = vpop.xlane.xlu0 %1119  ;;  %v1331_v54 = vmul.f32 %v1315_v33, %v3475_v18  ;;  %v2678_v47 = vpop.eup %2677 }
 0x363   : > { %v1184_v25 = vpop.xlane.xlu1 %1183  ;;  %v1368_v27 = vadd.f32 %v3573_v22, %v1348_v20 }
 0x364   : > { %v2680_v26 = vpop.eup %2679  ;;  %v1287_v31 = vadd.f32 1e-05, %v1271_v23  ;;  %v1206_v16 = vmul.f32 0.03125, %v1184_v25  ;;  %v1254_v34 = vsub.f32 %v1120_v56, %v1184_v25  ;;  %2689 = vrsqrt.f32 %v1223_v1 }
 0x365   : > { %v1384_v19 = vmax.f32 %v1368_v27, 0.0  ;;  %v1314_v59 = vsel %vm602_vm1, %v2678_v47, %v2680_v26  ;;  %v1351_v17 = vmul.f32 %v3567_v21, %v1331_v54 }
 0x366   : > { %2691 = vrsqrt.f32 %v1287_v31  ;;  %v1222_v3 = vadd.f32 1e-05, %v1206_v16  ;;  %v1270_v58 = vmul.f32 0.03125, %v1254_v34  ;;  %v1126_v18 = vpop.xlane.xlu0 %1125  ;;  %v1330_v37 = vmul.f32 %v1314_v59, %v3486_v0  ;;  %v2682_v38 = vpop.eup %2681 }
 0x367   : > { %2428 = vmatprep.mubr.msk.f32.mxu1 %vm660_vm0, %v1384_v19  ;;  %v1190_v61 = vpop.xlane.xlu1 %1189  ;;  %v1371_v36 = vadd.f32 %v3573_v22, %v1351_v17 }
 0x368   : > { %v2684_v42 = vpop.eup %2683  ;;  %v1286_v39 = vadd.f32 1e-05, %v1270_v58  ;;  %v1208_v8 = vmul.f32 0.03125, %v1190_v61  ;;  %v1256_v45 = vsub.f32 %v1126_v18, %v1190_v61  ;;  %2429 = vmatmul.mubr.msk.f32.gmra.mrb[22].mxu1 %vm660_vm0, %v1385_v41  ;;  %2693 = vrsqrt.f32 %v1222_v3 }
 0x369   : > { %v1350_v46 = vmul.f32 %v3567_v21, %v1330_v37  ;;  %v1317_v11 = vsel %vm602_vm1, %v2682_v38, %v2684_v42  ;;  %v1387_v43 = vmax.f32 %v1371_v36, 0.0  ;;  %v2769_v42 = vld [vmem:[%s3891_s4] sm:$0xf] }
 0x36a   : > { %2695 = vrsqrt.f32 %v1286_v39  ;;  %v1224_v0 = vadd.f32 1e-05, %v1208_v8  ;;  %v1272_v49 = vmul.f32 0.03125, %v1256_v45  ;;  %v1129_v50 = vpop.xlane.xlu0 %1128  ;;  %v1333_v5 = vmul.f32 %v1317_v11, %v3497_v28  ;;  %v2686_v35 = vpop.eup %2685 }
 0x36b   : > { %v1193_v29 = vpop.xlane.xlu1 %1192  ;;  %v1370_v63 = vadd.f32 %v3573_v22, %v1350_v46  ;;  %v1405_v39 = vrot.slane %v2769_v42, %v1404_v14 }
 0x36c   : > { %v2688_v57 = vpop.eup %2687  ;;  %v1288_v60 = vadd.f32 1e-05, %v1272_v49  ;;  %v1209_v55 = vmul.f32 0.03125, %v1193_v29  ;;  %v1257_v40 = vsub.f32 %v1129_v50, %v1193_v29  ;;  %2697 = vrsqrt.f32 %v1224_v0 }
 0x36d   : > { %v1386_v62 = vmax.f32 %v1370_v63, 0.0  ;;  %v1316_v32 = vsel %vm602_vm1, %v2686_v35, %v2688_v57  ;;  %v1353_v2 = vmul.f32 %v3567_v21, %v1333_v5 }
 0x36e   : > { %2699 = vrsqrt.f32 %v1288_v60  ;;  %v1225_v52 = vadd.f32 1e-05, %v1209_v55  ;;  %v1273_v4 = vmul.f32 0.03125, %v1257_v40  ;;  %v1332_v28 = vmul.f32 %v1316_v32, %v3508_v24  ;;  %v2690_v7 = vpop.eup %2689 }
 0x36f   : > { %2431 = vmatprep.mubr.msk.f32.mxu1 %vm660_vm0, %v1386_v62  ;;  %v1373_v48 = vadd.f32 %v3573_v22, %v1353_v2 }
 0x370   : > { %v2692_v51 = vpop.eup %2691  ;;  %v1289_v10 = vadd.f32 1e-05, %v1273_v4  ;;  %2432 = vmatmul.mubr.msk.f32.gmra.mrb[24].mxu1 %vm660_vm0, %v1387_v43  ;;  %v1352_v12 = vmul.f32 %v3567_v21, %v1332_v28  ;;  %2701 = vrsqrt.f32 %v1225_v52 }
 0x371   : > { %v1319_v9 = vsel %vm602_vm1, %v2690_v7, %v2692_v51  ;;  %v1389_v23 = vmax.f32 %v1373_v48, 0.0 }
 0x372   : > { %2703 = vrsqrt.f32 %v1289_v10  ;;  %v1372_v15 = vadd.f32 %v3573_v22, %v1352_v12  ;;  %v1335_v24 = vmul.f32 %v1319_v9, %v3519_v30  ;;  %v2694_v20 = vpop.eup %2693 }
 0x374   : > { %v2696_v33 = vpop.eup %2695  ;;  %v1388_v1 = vmax.f32 %v1372_v15, 0.0  ;;  %v1355_v54 = vmul.f32 %v3567_v21, %v1335_v24 }
 0x375   : > { %v1318_v56 = vsel %vm602_vm1, %v2694_v20, %v2696_v33 }
 0x376   : > { %2434 = vmatprep.mubr.msk.f32.mxu1 %vm660_vm0, %v1388_v1  ;;  %v1334_v47 = vmul.f32 %v1318_v56, %v3530_v44  ;;  %v2698_v25 = vpop.eup %2697  ;;  %v1375_v30 = vadd.f32 %v3573_v22, %v1355_v54 }
 0x377   : > { %2435 = vmatmul.mubr.msk.f32.gmra.mrb[26].mxu1 %vm660_vm0, %v1389_v23 }
 0x378   : > { %v2700_v27 = vpop.eup %2699  ;;  %v1354_v26 = vmul.f32 %v3567_v21, %v1334_v47  ;;  %v1391_v17 = vmax.f32 %v1375_v30, 0.0 }
 0x379   : > { %v1320_v31 = vsel %vm602_vm1, %v2698_v25, %v2700_v27 }
 0x37a   : > { %v1374_v16 = vadd.f32 %v3573_v22, %v1354_v26  ;;  %v1336_v34 = vmul.f32 %v1320_v31, %v3541_v53  ;;  %v2702_v41 = vpop.eup %2701 }
 0x37c   : > { %v2704_v19 = vpop.eup %2703  ;;  %v1390_v59 = vmax.f32 %v1374_v16, 0.0  ;;  %v1356_v44 = vmul.f32 %v3567_v21, %v1336_v34 }
 0x37d   : > { %v1321_v3 = vsel %vm602_vm1, %v2702_v41, %v2704_v19 }
 0x37e   : > { %2437 = vmatprep.mubr.msk.f32.mxu1 %vm660_vm0, %v1390_v59  ;;  %v1376_v58 = vadd.f32 %v3573_v22, %v1356_v44  ;;  %v1337_v18 = vmul.f32 %v1321_v3, %v3552_v6 }
 0x37f   : > { %2438 = vmatmul.mubr.msk.f32.gmra.mrb[28].mxu1 %vm660_vm0, %v1391_v17 }
 0x380   : > { %v1392_v37 = vmax.f32 %v1376_v58, 0.0  ;;  %v1357_v53 = vmul.f32 %v3567_v21, %v1337_v18 }
 0x382   : > { %2440 = vmatprep.mubr.msk.f32.mxu1 %vm660_vm0, %v1392_v37  ;;  %v1377_v38 = vadd.f32 %v3573_v22, %v1357_v53 }
 0x384   : > { %v1393_v61 = vmax.f32 %v1377_v38, 0.0 }
 0x386   : > { %2441 = vmatmul.mubr.msk.f32.gmra.mrb[30].mxu1 %vm660_vm0, %v1393_v61 }
 0x423   : > { %v2421_v6 = vpop.f32.mrb[16].mxu1 }
 0x424   : > { %v3672_v8 = vadd.f32 %v2421_v6, %v1405_v39  ;;  %v1520_v45 = vpop.f32.mrb[17].mxu1 }
 0x425   : > { %v3674_v36 = vadd.f32 %v1520_v45, %v1405_v39 }
 0x426   : > { %1601 = vrot.lane.b32.xlu1 %v3672_v8, %s2893_s24 }
 0x427   : > { %1599 = vrot.lane.b32.xlu0 %v3674_v36, %s2893_s24 }
 0x42b   : > { %v2424_v21 = vpop.f32.mrb[18].mxu1 }
 0x42c   : > { %v3680_v13 = vadd.f32 %v2424_v21, %v1405_v39  ;;  %v1530_v22 = vpop.f32.mrb[19].mxu1 }
 0x42d   : > { %v3684_v46 = vadd.f32 %v1530_v22, %v1405_v39 }
 0x42e   : > { %1605 = vrot.lane.b32.xlu1 %v3680_v13, %s2893_s24 }
 0x432   : > { %1603 = vrot.lane.b32.xlu1 %v3684_v46, %s2893_s24 }
 0x433   : > { %v2427_v11 = vpop.f32.mrb[20].mxu1 }
 0x434   : > { %v3688_v0 = vadd.f32 %v2427_v11, %v1405_v39  ;;  %v1540_v49 = vpop.f32.mrb[21].mxu1 }
 0x435   : > { %v3690_v50 = vadd.f32 %v1540_v49, %v1405_v39 }
 0x436   : > { %1609 = vrot.lane.b32.xlu1 %v3688_v0, %s2893_s24 }
 0x437   : > { %1607 = vrot.lane.b32.xlu0 %v3690_v50, %s2893_s24 }
 0x43b   : > { %v2430_v5 = vpop.f32.mrb[22].mxu1 }
 0x43c   : > { %v3696_v35 = vadd.f32 %v2430_v5, %v1405_v39  ;;  %v1550_v29 = vpop.f32.mrb[23].mxu1 }
 0x43d   : > { %v3698_v63 = vadd.f32 %v1550_v29, %v1405_v39 }
 0x43e   : > { %1613 = vrot.lane.b32.xlu1 %v3696_v35, %s2893_s24 }
 0x43f   : > { %1611 = vrot.lane.b32.xlu0 %v3698_v63, %s2893_s24 }
 0x443   : > { %v2433_v57 = vpop.f32.mrb[24].mxu1 }
 0x444   : > { %v3704_v60 = vadd.f32 %v2433_v57, %v1405_v39  ;;  %v1560_v55 = vpop.f32.mrb[25].mxu1 }
 0x445   : > { %v3706_v40 = vadd.f32 %v1560_v55, %v1405_v39 }
 0x446   : > { %1617 = vrot.lane.b32.xlu1 %v3704_v60, %s2893_s24 }
 0x447   : > { %1615 = vrot.lane.b32.xlu0 %v3706_v40, %s2893_s24 }
 0x44a   : > { %v2436_v43 = vpop.f32.mrb[26].mxu1 }
 0x44b   : > { %v3712_v62 = vadd.f32 %v2436_v43, %v1405_v39  ;;  %v1570_v32 = vpop.f32.mrb[27].mxu1 }
 0x44c   : > { %v3714_v2 = vadd.f32 %v1570_v32, %v1405_v39 }
 0x44d   : > { %1621 = vrot.lane.b32.xlu1 %v3712_v62, %s2893_s24 }
 0x44e   : > { %1619 = vrot.lane.b32.xlu0 %v3714_v2, %s2893_s24 }
 0x452   : > { %v2439_v52 = vpop.f32.mrb[28].mxu1 }
 0x453   : > { %v3720_v4 = vadd.f32 %v2439_v52, %v1405_v39  ;;  %v1580_v28 = vpop.f32.mrb[29].mxu1 }
 0x454   : > { %v3722_v7 = vadd.f32 %v1580_v28, %v1405_v39 }
 0x455   : > { %1625 = vrot.lane.b32.xlu1 %v3720_v4, %s2893_s24 }
 0x456   : > { %1623 = vrot.lane.b32.xlu0 %v3722_v7, %s2893_s24 }
 0x459   : > { %v2442_v51 = vpop.f32.mrb[30].mxu1 }
 0x45a   : > { %v3728_v10 = vadd.f32 %v2442_v51, %v1405_v39  ;;  %v1590_v12 = vpop.f32.mrb[31].mxu1 }
 0x45b   : > { %v3730_v48 = vadd.f32 %v1590_v12, %v1405_v39 }
 0x45c   : > { %1629 = vrot.lane.b32.xlu1 %v3728_v10, %s2893_s24 }
 0x45d   : > { %1627 = vrot.lane.b32.xlu0 %v3730_v48, %s2893_s24 }
 0x498   : > { %v1602_v9 = vpop.permute.xlu1 %1601 }
 0x499   : > { %v2104_v15 = vmul.f32 -1.442695, %v1602_v9  ;;  %v1600_v24 = vpop.permute.xlu0 %1599 }
 0x49a   : > { %v2103_v20 = vmul.f32 -1.442695, %v1600_v24 }
 0x49b   : > { %2705 = vpow2.f32 %v2104_v15 }
 0x49c   : > { %2707 = vpow2.f32 %v2103_v20 }
 0x4a0   : > { %v1606_v33 = vpop.permute.xlu1 %1605 }
 0x4a1   : > { %v2106_v1 = vmul.f32 -1.442695, %v1606_v33 }
 0x4a3   : > { %2709 = vpow2.f32 %v2106_v1 }
 0x4a4   : > { %v1604_v23 = vpop.permute.xlu1 %1603 }
 0x4a5   : > { %v2706_v56 = vpop.eup %2705  ;;  %v2105_v54 = vmul.f32 -1.442695, %v1604_v23 }
 0x4a6   : > { %v2708_v47 = vpop.eup %2707  ;;  %v1680_v25 = vadd.f32 1.0, %v2706_v56 }
 0x4a7   : > { %v1679_v27 = vadd.f32 1.0, %v2708_v47  ;;  %2711 = vpow2.f32 %v2105_v54 }
 0x4a8   : > { %2713 = vrcp.f32 %v1680_v25  ;;  %v1610_v26 = vpop.permute.xlu1 %1609 }
 0x4a9   : > { %2715 = vrcp.f32 %v1679_v27  ;;  %v2108_v30 = vmul.f32 -1.442695, %v1610_v26  ;;  %v1608_v31 = vpop.permute.xlu0 %1607 }
 0x4aa   : > { %v2107_v16 = vmul.f32 -1.442695, %v1608_v31 }
 0x4ab   : > { %2717 = vpow2.f32 %v2108_v30 }
 0x4ac   : > { %2719 = vpow2.f32 %v2107_v16 }
 0x4ad   : > { %v2710_v34 = vpop.eup %2709 }
 0x4ae   : > { %v1682_v41 = vadd.f32 1.0, %v2710_v34 }
 0x4b0   : > { %2721 = vrcp.f32 %v1682_v41  ;;  %v1614_v19 = vpop.permute.xlu1 %1613 }
 0x4b1   : > { %v2712_v59 = vpop.eup %2711  ;;  %v2110_v44 = vmul.f32 -1.442695, %v1614_v19  ;;  %v1612_v17 = vpop.permute.xlu0 %1611 }
 0x4b2   : > { %v2714_v3 = vpop.eup %2713  ;;  %v1681_v58 = vadd.f32 1.0, %v2712_v59  ;;  %v2109_v18 = vmul.f32 -1.442695, %v1612_v17 }
 0x4b3   : > { %v2716_v37 = vpop.eup %2715  ;;  %v1728_v53 = vmul.f32 %v2714_v3, %v3672_v8  ;;  %2723 = vpow2.f32 %v2110_v44 }
 0x4b4   : > { %v1727_v38 = vmul.f32 %v2716_v37, %v3674_v36  ;;  %2725 = vrcp.f32 %v1681_v58 }
 0x4b5   : > { %v2718_v61 = vpop.eup %2717  ;;  %1744 = vst.msk [vmem:[%s3739_s18 + $0x8] sm:$0xff] %vm660_vm0, %v1728_v53  ;;  %2727 = vpow2.f32 %v2109_v18 }
 0x4b6   : > { %v2720_v14 = vpop.eup %2719  ;;  %1743 = vst.msk [vmem:[%s3739_s18] sm:$0xff] %vm660_vm0, %v1727_v38  ;;  %v1684_v42 = vadd.f32 1.0, %v2718_v61 }
 0x4b7   : > { %v1683_v39 = vadd.f32 1.0, %v2720_v14 }
 0x4b8   : > { %2729 = vrcp.f32 %v1684_v42  ;;  %v1618_v6 = vpop.permute.xlu1 %1617 }
 0x4b9   : > { %2731 = vrcp.f32 %v1683_v39  ;;  %v2112_v8 = vmul.f32 -1.442695, %v1618_v6  ;;  %v1616_v45 = vpop.permute.xlu0 %1615 }
 0x4ba   : > { %v2722_v36 = vpop.eup %2721  ;;  %v2111_v21 = vmul.f32 -1.442695, %v1616_v45 }
 0x4bb   : > { %v1730_v22 = vmul.f32 %v2722_v36, %v3680_v13  ;;  %2733 = vpow2.f32 %v2112_v8 }
 0x4bc   : > { %2735 = vpow2.f32 %v2111_v21 }
 0x4bd   : > { %v2724_v11 = vpop.eup %2723  ;;  %1746 = vst.msk [vmem:[%s3739_s18 + $0x18] sm:$0xff] %vm660_vm0, %v1730_v22 }
 0x4be   : > { %v2726_v49 = vpop.eup %2725  ;;  %v1686_v5 = vadd.f32 1.0, %v2724_v11 }
 0x4bf   : > { %v2728_v29 = vpop.eup %2727  ;;  %v1729_v57 = vmul.f32 %v2726_v49, %v3684_v46  ;;  %v1622_v55 = vpop.permute.xlu1 %1621 }
 0x4c0   : > { %2737 = vrcp.f32 %v1686_v5  ;;  %v1685_v43 = vadd.f32 1.0, %v2728_v29  ;;  %v2114_v32 = vmul.f32 -1.442695, %v1622_v55  ;;  %v1620_v52 = vpop.permute.xlu0 %1619 }
 0x4c1   : > { %1745 = vst.msk [vmem:[%s3739_s18 + $0x10] sm:$0xff] %vm660_vm0, %v1729_v57  ;;  %v2113_v13 = vmul.f32 -1.442695, %v1620_v52 }
 0x4c2   : > { %v2730_v28 = vpop.eup %2729  ;;  %2739 = vrcp.f32 %v1685_v43 }
 0x4c3   : > { %v2732_v51 = vpop.eup %2731  ;;  %v1732_v12 = vmul.f32 %v2730_v28, %v3688_v0  ;;  %2741 = vpow2.f32 %v2114_v32 }
 0x4c4   : > { %v1731_v9 = vmul.f32 %v2732_v51, %v3690_v50  ;;  %2743 = vpow2.f32 %v2113_v13 }
 0x4c5   : > { %v2734_v46 = vpop.eup %2733  ;;  %1748 = vst.msk [vmem:[%s3739_s18 + $0x28] sm:$0xff] %vm660_vm0, %v1732_v12 }
 0x4c6   : > { %v2736_v15 = vpop.eup %2735  ;;  %1747 = vst.msk [vmem:[%s3739_s18 + $0x20] sm:$0xff] %vm660_vm0, %v1731_v9  ;;  %v1688_v24 = vadd.f32 1.0, %v2734_v46 }
 0x4c7   : > { %v1687_v20 = vadd.f32 1.0, %v2736_v15  ;;  %v1626_v33 = vpop.permute.xlu1 %1625 }
 0x4c8   : > { %2745 = vrcp.f32 %v1688_v24  ;;  %v2116_v1 = vmul.f32 -1.442695, %v1626_v33  ;;  %v1624_v23 = vpop.permute.xlu0 %1623 }
 0x4c9   : > { %2747 = vrcp.f32 %v1687_v20  ;;  %v2115_v0 = vmul.f32 -1.442695, %v1624_v23 }
 0x4ca   : > { %v2738_v56 = vpop.eup %2737  ;;  %2749 = vpow2.f32 %v2116_v1 }
 0x4cb   : > { %v1734_v50 = vmul.f32 %v2738_v56, %v3696_v35  ;;  %2751 = vpow2.f32 %v2115_v0 }
 0x4cc   : > { %v2740_v54 = vpop.eup %2739 }
 0x4cd   : > { %v2742_v47 = vpop.eup %2741  ;;  %1750 = vst.msk [vmem:[%s3739_s18 + $0x38] sm:$0xff] %vm660_vm0, %v1734_v50  ;;  %v1733_v25 = vmul.f32 %v2740_v54, %v3698_v63 }
 0x4ce   : > { %v2744_v27 = vpop.eup %2743  ;;  %v1690_v26 = vadd.f32 1.0, %v2742_v47  ;;  %v1630_v30 = vpop.permute.xlu1 %1629 }
 0x4cf   : > { %1749 = vst.msk [vmem:[%s3739_s18 + $0x30] sm:$0xff] %vm660_vm0, %v1733_v25  ;;  %v1689_v31 = vadd.f32 1.0, %v2744_v27  ;;  %v2118_v16 = vmul.f32 -1.442695, %v1630_v30  ;;  %v1628_v34 = vpop.permute.xlu0 %1627 }
 0x4d0   : > { %2753 = vrcp.f32 %v1690_v26  ;;  %v2117_v41 = vmul.f32 -1.442695, %v1628_v34 }
 0x4d1   : > { %2755 = vrcp.f32 %v1689_v31 }
 0x4d2   : > { %v2746_v35 = vpop.eup %2745  ;;  %2757 = vpow2.f32 %v2118_v16 }
 0x4d3   : > { %v2748_v19 = vpop.eup %2747  ;;  %v1736_v59 = vmul.f32 %v2746_v35, %v3704_v60  ;;  %2759 = vpow2.f32 %v2117_v41 }
 0x4d4   : > { %v2750_v63 = vpop.eup %2749  ;;  %v1735_v44 = vmul.f32 %v2748_v19, %v3706_v40 }
 0x4d5   : > { %v2752_v17 = vpop.eup %2751  ;;  %1752 = vst.msk [vmem:[%s3739_s18 + $0x48] sm:$0xff] %vm660_vm0, %v1736_v59  ;;  %v1692_v3 = vadd.f32 1.0, %v2750_v63 }
 0x4d6   : > { %1751 = vst.msk [vmem:[%s3739_s18 + $0x40] sm:$0xff] %vm660_vm0, %v1735_v44  ;;  %v1691_v58 = vadd.f32 1.0, %v2752_v17 }
 0x4d7   : > { %2761 = vrcp.f32 %v1692_v3 }
 0x4d8   : > { %2763 = vrcp.f32 %v1691_v58 }
 0x4da   : > { %v2754_v18 = vpop.eup %2753 }
 0x4db   : > { %v2756_v37 = vpop.eup %2755  ;;  %v1738_v60 = vmul.f32 %v2754_v18, %v3712_v62 }
 0x4dc   : > { %v2758_v53 = vpop.eup %2757  ;;  %v1737_v38 = vmul.f32 %v2756_v37, %v3714_v2 }
 0x4dd   : > { %v2760_v40 = vpop.eup %2759  ;;  %1754 = vst.msk [vmem:[%s3739_s18 + $0x58] sm:$0xff] %vm660_vm0, %v1738_v60  ;;  %v1694_v61 = vadd.f32 1.0, %v2758_v53 }
 0x4de   : > { %1753 = vst.msk [vmem:[%s3739_s18 + $0x50] sm:$0xff] %vm660_vm0, %v1737_v38  ;;  %v1693_v14 = vadd.f32 1.0, %v2760_v40 }
 0x4df   : > { %2765 = vrcp.f32 %v1694_v61 }
 0x4e0   : > { %2767 = vrcp.f32 %v1693_v14 }
 0x4e1   : > { %v2762_v42 = vpop.eup %2761 }
 0x4e2   : > { %v2764_v39 = vpop.eup %2763  ;;  %v1740_v6 = vmul.f32 %v2762_v42, %v3720_v4 }
 0x4e3   : > { %v1739_v62 = vmul.f32 %v2764_v39, %v3722_v7 }
 0x4e4   : > { %1756 = vst.msk [vmem:[%s3739_s18 + $0x68] sm:$0xff] %vm660_vm0, %v1740_v6 }
 0x4e5   : > { %1755 = vst.msk [vmem:[%s3739_s18 + $0x60] sm:$0xff] %vm660_vm0, %v1739_v62 }
 0x4e7   : > { %1765 = sbr.rel (!%p3901_p6) target bundleno = 1311 (0x51f), region = 48 }
 0x4e9   : > { %v2766_v2 = vpop.eup %2765 }
 0x4ea   : > { %v2768_v8 = vpop.eup %2767  ;;  %v1742_v45 = vmul.f32 %v2766_v2, %v3728_v10 }
 0x4eb   : > { %v1741_v36 = vmul.f32 %v2768_v8, %v3730_v48 }
 0x4ec   : > { %1758 = vst.msk [vmem:[%s3739_s18 + $0x78] sm:$0xff] %vm660_vm0, %v1742_v45 }
 0x4ed   : > { %1757 = vst.msk [vmem:[%s3739_s18 + $0x70] sm:$0xff] %vm660_vm0, %v1741_v36 }
 0x4ee   : > { %s3909_s27 = smov (!%p1768_p7, %s1767_s27), 16 }
 0x4ef   : > { %s2121_s10 = sshll.u32 %s3909_s27, 7 }
 0x4f0   : > { %p2124_p9 = scmp.eq.s32.totalorder %s2121_s10, 0 }
 0x4f1   : > { %s3800_s11 = sshrl.u32 (!%p2124_p9), %s3909_s27, 4 }
 0x4f2   : > { %1776 = sbr.rel (%p2124_p9) target bundleno = 1311 (0x51f), region = 52  ;;  %p2125_p13 = scmp.le.s32.totalorder (!%p2124_p9), %s3800_s11, 0 }
 0x4f9   : > { %1993 = sbr.rel (%p2125_p13) target bundleno = 1290 (0x50a), region = 130  ;;  %s3902_s21 = smov (!%p2125_p13), %s3794_s9 }
 0x4fa   : > { %s3903_s26 = smov (!%p2125_p13), %s3739_s18  ;;  %s3809_s20 = smov (!%p2125_p13), 0  }
 0x4fb   : > { %s3811_s12 = smov (!%p2125_p13), 0  }
 0x500 LB: >> { %v1868_v4 = vld [vmem:[%s2864_s26] sm:$0xff]  ;;  %v1870_v7 = vld [vmem:[%s2864_s26 + $0x8] sm:$0xff]  ;;  %v1872_v10 = vld [vmem:[%s2864_s26 + $0x10] sm:$0xff]  ;;  %s1900_s13 = sadd.s32 1, %s2868_s20  ;;  %s1862_s12 = sadd.s32 1, %s2872_s12   ;;  %s2872_s12 = sphi %s3811_s12, %s1862_s12   ;;  %s2868_s20 = sphi %s3809_s20, %s3904_s20   ;;  %s2864_s26 = sphi %s3903_s26, %s1905_s26   ;;  %s2860_s21 = sphi %s3902_s21, %s1906_s21  }
 0x501   : >> { %1869 = vst [vmem:[%s2860_s21] sm:$0xff] %v1868_v4  ;;  %1871 = vst [vmem:[%s2860_s21 + $0x8] sm:$0xff] %v1870_v7  ;;  %v1874_v48 = vld [vmem:[%s2864_s26 + $0x18] sm:$0xff]  ;;  %v1876_v21 = vld [vmem:[%s2864_s26 + $0x20] sm:$0xff]  ;;  %p1901_p0 = scmp.ge.s32.totalorder %s1900_s13, %s3800_s11  ;;  %p1861_p1 = scmp.ge.s32.totalorder %s1862_s12, %s3800_s11 }
 0x502   : >> { %1873 = vst [vmem:[%s2860_s21 + $0x10] sm:$0xff] %v1872_v10  ;;  %v1878_v22 = vld [vmem:[%s2864_s26 + $0x28] sm:$0xff]  ;;  %1875 = vst [vmem:[%s2860_s21 + $0x18] sm:$0xff] %v1874_v48  ;;  %v1880_v11 = vld [vmem:[%s2864_s26 + $0x30] sm:$0xff] }
 0x503   : >> { %1877 = vst [vmem:[%s2860_s21 + $0x20] sm:$0xff] %v1876_v21  ;;  %1879 = vst [vmem:[%s2860_s21 + $0x28] sm:$0xff] %v1878_v22  ;;  %v1882_v49 = vld [vmem:[%s2864_s26 + $0x38] sm:$0xff]  ;;  %v1884_v5 = vld [vmem:[%s2864_s26 + $0x40] sm:$0xff]  ;;  %s3911_s13 = smov (%p1901_p0, %s1900_s13), 0  ;;  %1864 = sbr.rel (!%p1861_p1) target bundleno = 1280 (0x500), region = 136 }
 0x504   : >> { %1881 = vst [vmem:[%s2860_s21 + $0x30] sm:$0xff] %v1880_v11  ;;  %1883 = vst [vmem:[%s2860_s21 + $0x38] sm:$0xff] %v1882_v49  ;;  %v1886_v29 = vld [vmem:[%s2864_s26 + $0x48] sm:$0xff]  ;;  %v1888_v57 = vld [vmem:[%s2864_s26 + $0x50] sm:$0xff]  ;;  %s2126_s14 = sshll.u32 %s3911_s13, 7  ;;  %s3904_s20 = smov %s3911_s13 }
 0x505   : >> { %1885 = vst [vmem:[%s2860_s21 + $0x40] sm:$0xff] %v1884_v5  ;;  %v1890_v55 = vld [vmem:[%s2864_s26 + $0x58] sm:$0xff]  ;;  %1887 = vst [vmem:[%s2860_s21 + $0x48] sm:$0xff] %v1886_v29  ;;  %v1892_v43 = vld [vmem:[%s2864_s26 + $0x60] sm:$0xff] }
 0x506   : >> { %1889 = vst [vmem:[%s2860_s21 + $0x50] sm:$0xff] %v1888_v57  ;;  %1891 = vst [vmem:[%s2860_s21 + $0x58] sm:$0xff] %v1890_v55  ;;  %v1894_v32 = vld [vmem:[%s2864_s26 + $0x68] sm:$0xff]  ;;  %v1896_v52 = vld [vmem:[%s2864_s26 + $0x70] sm:$0xff] }
 0x507   : >> { %1893 = vst [vmem:[%s2860_s21 + $0x60] sm:$0xff] %v1892_v43  ;;  %1895 = vst [vmem:[%s2860_s21 + $0x68] sm:$0xff] %v1894_v32  ;;  %v1898_v13 = vld [vmem:[%s2864_s26 + $0x78] sm:$0xff]  ;;  %s1905_s26 = scalar_lea.vmem %s3739_s18, %s2126_s14 [#allocation4]  }
 0x508   : >> { %1897 = vst [vmem:[%s2860_s21 + $0x70] sm:$0xff] %v1896_v52  ;;  %1899 = vst [vmem:[%s2860_s21 + $0x78] sm:$0xff] %v1898_v13  ;;  %s1906_s21 = scalar_lea.vmem %s3794_s9, %s2126_s14  }
 0x50a PF: > { %s3869_s15 = sand.u32 15, %s3909_s27   ;;  %s2137_s23 = sshll.u32 %s3800_s11, 7 }
 0x50b   : > { %s1911_s16 = scalar_lea.vmem %s3739_s18, %s2137_s23 [#allocation4]   ;;  %s1913_s6 = scalar_lea.vmem %s3794_s9, %s2137_s23  }
 0x50c   : > { %p2131_p2 = scmp.le.s32.totalorder %s3869_s15, 0 }
 0x50d   : > { %s2874_s17 = smov (!%p2131_p2), %s1913_s6   ;;  %s2878_s24 = smov (!%p2131_p2), %s1911_s16  }
 0x50e   : > { %2007 = sbr.rel (%p2131_p2) target bundleno = 1311 (0x51f), region = 141  ;;  %s2882_s28 = smov (!%p2131_p2), 0  }
 0x50f   : > { %s2886_s29 = smov (!%p2131_p2), 0  }
 0x515 LB: >> { %v1923_v28 = vld [vmem:[%s2880_s24] sm:$0xff]  ;;  %s1925_s27 = sadd.s32 1, %s2884_s28  ;;  %s1917_s29 = sadd.s32 1, %s2888_s29   ;;  %s2888_s29 = sphi %s2886_s29, %s1917_s29   ;;  %s2884_s28 = sphi %s2882_s28, %s2883_s28   ;;  %s2880_s24 = sphi %s2878_s24, %s1930_s24   ;;  %s2876_s17 = sphi %s2874_s17, %s1931_s17  }
 0x516   : >> { %1924 = vst [vmem:[%s2876_s17] sm:$0xff] %v1923_v28  ;;  %p1926_p3 = scmp.ge.s32.totalorder %s1925_s27, %s3869_s15  ;;  %p1916_p5 = scmp.ge.s32.totalorder %s1917_s29, %s3869_s15 }
 0x518   : >> { %s3913_s27 = smov (%p1926_p3, %s1925_s27), 0  ;;  %1919 = sbr.rel (!%p1916_p5) target bundleno = 1301 (0x515), region = 147 }
 0x519   : >> { %s2132_s18 = sshll.u32 %s3913_s27, 3  ;;  %s2883_s28 = smov %s3913_s27  }
 0x51a   : >> { %s1930_s24 = scalar_lea.vmem %s1911_s16, %s2132_s18 [#allocation4]   ;;  %s1931_s17 = scalar_lea.vmem %s1913_s6, %s2132_s18  }
 0x51f PF: > { %p13_p8 = scmp.ge.s32.totalorder %s2939_s22, 5   ;;  %s3905_s18 = smov %s2852_s19 }
 0x520   : > { %s3906_s19 = smov %s2947_s25  ;;  %s3907_s20 = smov %s2939_s22 }
 0x521   :  { %15 = sbr.rel (!%p13_p8) target bundleno = 2 (0x2), region = 158 }
 0x528   :  { %1947 = vsyncpa [#allocation3], 1 }
 0x529   :  { %1949 = vsyncpa [#allocation3 + $0x1], 1 }

</bundles_post_ra>
